<compile_context>
chip_gen: v7x
topology: tpu7x:2x2x1
jax: 0.10.0
libtpu: 0.0.40
codegen_flags: <defaults>
</compile_context>

<pallas_src>
import functools

import jax
import jax.numpy as jnp
from jax.experimental import pallas as pl
from jax.experimental.pallas import tpu as pltpu


# ------------------------------------------------------------------
# Fused OA kernel (one batch element per grid step)
# ------------------------------------------------------------------
def _oa_kernel(x_ref, wqk_ref, wv_ref, bv_ref, wt_ref, bt_ref, o_ref, *,
               mxu_dtype):
    x = x_ref[0]                                           # [N, C] f32, channel-last
    xm = x.astype(mxu_dtype)

    # Shared q/k projection (q_conv.weight IS k_conv.weight) -> compute once.
    qk = jnp.dot(xm, wqk_ref[...].astype(mxu_dtype),
                 preferred_element_type=jnp.float32)       # [N, C/4]

    # energy[i, j] = <qk_i, qk_j>  (symmetric Gram matrix)
    qkm = qk.astype(mxu_dtype)
    energy = jax.lax.dot_general(
        qkm, qkm, (((1,), (1,)), ((), ())),
        preferred_element_type=jnp.float32)                # [N, N]

    # Softmax over keys (last axis).
    m = jnp.max(energy, axis=-1, keepdims=True)
    e = jnp.exp(energy - m)
    attn = e / jnp.sum(e, axis=-1, keepdims=True)          # [N, N]

    # PCT offset-attention renormalisation: divide by the column sums
    # (sum over queries, dim=1 in the PyTorch [B, Nq, Nk] layout).
    colsum = jnp.sum(attn, axis=0, keepdims=True)          # [1, N]
    attn = attn / (1e-9 + colsum)

    # Value projection (with bias).
    v = jnp.dot(xm, wv_ref[...].astype(mxu_dtype),
                preferred_element_type=jnp.float32) + bv_ref[...]   # [N, C]

    # x_r[j, :] = sum_i attn[i, j] * v[i, :]   ==   attn^T @ v
    x_r = jax.lax.dot_general(
        attn.astype(mxu_dtype), v.astype(mxu_dtype),
        (((0,), (0,)), ((), ())),
        preferred_element_type=jnp.float32)                # [N, C]

    # trans_conv + (folded, eval-mode) BN + ReLU on the offset, residual add.
    y = (x - x_r).astype(mxu_dtype)
    t = jnp.dot(y, wt_ref[...].astype(mxu_dtype),
                preferred_element_type=jnp.float32) + bt_ref[...]   # [N, C]
    o_ref[0] = (x + jnp.maximum(t, 0.0)).astype(o_ref.dtype)


def oa_forward(x, params, *, mxu_dtype=jnp.float32):
    """Offset-Attention forward.  x: [B, C, N] -> [B, C, N]."""
    B, C, N = x.shape
    C4 = params['w_qk'].shape[1]

    x_cl = jnp.transpose(x, (0, 2, 1))                     # [B, N, C]

    # Fold eval-mode BatchNorm into trans_conv (trace-time, free).
    scale = params['bn_gamma'] * jax.lax.rsqrt(params['bn_var'] + 1e-5)
    shift = params['bn_beta'] - params['bn_mean'] * scale
    wt = params['w_trans'] * scale[None, :]
    bt = params['b_trans'] * scale + shift

    kernel = functools.partial(_oa_kernel, mxu_dtype=mxu_dtype)
    out_cl = pl.pallas_call(
        kernel,
        out_shape=jax.ShapeDtypeStruct((B, N, C), x.dtype),
        grid=(B,),
        in_specs=[
            pl.BlockSpec((1, N, C), lambda b: (b, 0, 0)),  # x (channel-last)
            pl.BlockSpec((C, C4), lambda b: (0, 0)),       # shared q/k weight
            pl.BlockSpec((C, C), lambda b: (0, 0)),        # v weight
            pl.BlockSpec((1, C), lambda b: (0, 0)),        # v bias
            pl.BlockSpec((C, C), lambda b: (0, 0)),        # trans weight (BN-folded)
            pl.BlockSpec((1, C), lambda b: (0, 0)),        # trans bias  (BN-folded)
        ],
        out_specs=pl.BlockSpec((1, N, C), lambda b: (b, 0, 0)),
        compiler_params=pltpu.CompilerParams(
            dimension_semantics=("parallel",)),            # megacore on v7x
    )(x_cl, params['w_qk'], params['w_v'], params['b_v'].reshape(1, C),
      wt, bt.reshape(1, C))

    return jnp.transpose(out_cl, (0, 2, 1))                # back to [B, C, N]


# ------------------------------------------------------------------
# Plain-JAX reference (mirrors the PyTorch module, eval-mode BN)
# ------------------------------------------------------------------
def oa_reference(x, params):
    x_cl = jnp.transpose(x, (0, 2, 1))                     # [B, N, C]
    qk = x_cl @ params['w_qk']                             # [B, N, C/4]
    energy = jnp.einsum('bid,bjd->bij', qk, qk)            # [B, N, N]
    attention = jax.nn.softmax(energy, axis=-1)
    attention = attention / (1e-9 + attention.sum(axis=1, keepdims=True))
    x_v = x_cl @ params['w_v'] + params['b_v']             # [B, N, C]
    x_r = jnp.einsum('bic,bij->bjc', x_v, attention)       # [B, N, C]
    scale = params['bn_gamma'] / jnp.sqrt(params['bn_var'] + 1e-5)
    shift = params['bn_beta'] - params['bn_mean'] * scale
    t = (x_cl - x_r) @ params['w_trans'] + params['b_trans']
    t = jax.nn.relu(t * scale + shift)
    return jnp.transpose(x_cl + t, (0, 2, 1))


# ------------------------------------------------------------------
# Deterministic parameter init (channel-last weight layout [Cin, Cout])
# ------------------------------------------------------------------
def init_params(key, channels):
    c4 = channels // 4
    ks = jax.random.split(key, 9)

    def conv_w(k, cin, cout):
        return jax.random.normal(k, (cin, cout), jnp.float32) / jnp.sqrt(cin)

    return {
        'w_qk': conv_w(ks[0], channels, c4),       # shared q_conv / k_conv weight
        'w_v': conv_w(ks[1], channels, channels),
        'b_v': 0.1 * jax.random.normal(ks[2], (channels,), jnp.float32),
        'w_trans': conv_w(ks[3], channels, channels),
        'b_trans': 0.1 * jax.random.normal(ks[4], (channels,), jnp.float32),
        # BatchNorm1d (eval-mode running stats)
        'bn_gamma': 1.0 + 0.1 * jax.random.normal(ks[5], (channels,), jnp.float32),
        'bn_beta': 0.1 * jax.random.normal(ks[6], (channels,), jnp.float32),
        'bn_mean': 0.1 * jax.random.normal(ks[7], (channels,), jnp.float32),
        'bn_var': jnp.ones((channels,), jnp.float32),
    }


if __name__ == "__main__":
    key = jax.random.PRNGKey(0)
    kx, kp = jax.random.split(key)

    B, C, N = 2, 128, 256                                  # small OA shapes
    x = jax.random.normal(kx, (B, C, N), jnp.float32)
    params = init_params(kp, C)

    # f32 MXU path (bit-faithful to the reference semantics).
    fwd = jax.jit(oa_forward)
    out = fwd(x, params)
    jax.block_until_ready(out)

    assert out.shape == (B, C, N), out.shape
    assert bool(jnp.all(jnp.isfinite(out)))

    ref = oa_reference(x, params)
    err = float(jnp.max(jnp.abs(out - ref)))
    assert err < 5e-3, f"max abs err vs reference: {err}"

    # Optional bf16-operand MXU path (f32 accumulation) — perf-feedback item.
    fwd_bf16 = jax.jit(functools.partial(oa_forward, mxu_dtype=jnp.bfloat16))
    out_bf16 = fwd_bf16(x, params)
    jax.block_until_ready(out_bf16)
    assert out_bf16.shape == (B, C, N)
    assert bool(jnp.all(jnp.isfinite(out_bf16)))

    print("KERNEL_OK")
</pallas_src>

<mosaic_0001>
module attributes {stable_mosaic.version = 11 : i64} {
  func.func @_oa_kernel(%arg0: i32, %arg1: memref<1x256x128xf32, #tpu.memory_space<vmem>>, %arg2: memref<128x32xf32, #tpu.memory_space<vmem>>, %arg3: memref<128x128xf32, #tpu.memory_space<vmem>>, %arg4: memref<1x128xf32, #tpu.memory_space<vmem>>, %arg5: memref<128x128xf32, #tpu.memory_space<vmem>>, %arg6: memref<1x128xf32, #tpu.memory_space<vmem>>, %arg7: memref<1x256x128xf32, #tpu.memory_space<vmem>>) attributes {dimension_semantics = [#tpu.dimension_semantics<parallel>], iteration_bounds = array<i64: 2>, scalar_prefetch = 0 : i64, scratch_operands = 0 : i64, tpu.core_type = #tpu.core_type<tc>, window_params = [{transform_indices = @transform_0, window_bounds = array<i64: 1, 256, 128>}, {pipeline_mode = #tpu.pipeline_mode<synchronous>, transform_indices = @transform_1, window_bounds = array<i64: 128, 32>}, {pipeline_mode = #tpu.pipeline_mode<synchronous>, transform_indices = @transform_2, window_bounds = array<i64: 128, 128>}, {pipeline_mode = #tpu.pipeline_mode<synchronous>, transform_indices = @transform_3, window_bounds = array<i64: 1, 128>}, {pipeline_mode = #tpu.pipeline_mode<synchronous>, transform_indices = @transform_4, window_bounds = array<i64: 128, 128>}, {pipeline_mode = #tpu.pipeline_mode<synchronous>, transform_indices = @transform_5, window_bounds = array<i64: 1, 128>}, {transform_indices = @transform_6, window_bounds = array<i64: 1, 256, 128>}]} {
    %c0 = arith.constant 0 : index
    %c0_0 = arith.constant 0 : index
    %c0_1 = arith.constant 0 : index
    %0 = vector.load %arg1[%c0, %c0_0, %c0_1] : memref<1x256x128xf32, #tpu.memory_space<vmem>>, vector<1x256x128xf32>
    %1 = vector.shape_cast %0 : vector<1x256x128xf32> to vector<256x128xf32>
    %c0_2 = arith.constant 0 : index
    %c0_3 = arith.constant 0 : index
    %2 = vector.load %arg2[%c0_2, %c0_3] : memref<128x32xf32, #tpu.memory_space<vmem>>, vector<128x32xf32>
    %cst = arith.constant dense<0.000000e+00> : vector<256x32xf32>
    %3 = tpu.matmul %1, %2, %cst {dimension_numbers = #tpu.dot_dimension_numbers<[1], [0], [0], [1], [0, 0, 1, 1], [], []>} : vector<256x128xf32>, vector<128x32xf32>, vector<256x32xf32> -> vector<256x32xf32>
    %cst_4 = arith.constant dense<0.000000e+00> : vector<256x256xf32>
    %4 = tpu.matmul %3, %3, %cst_4 {dimension_numbers = #tpu.dot_dimension_numbers<[1], [1], [0], [0], [0, 0, 1, 0], [], []>} : vector<256x32xf32>, vector<256x32xf32>, vector<256x256xf32> -> vector<256x256xf32>
    %cst_5 = arith.constant dense<0xFF800000> : vector<256xf32>
    %5 = vector.multi_reduction <maximumf>, %4, %cst_5 [1] : vector<256x256xf32> to vector<256xf32>
    %6 = vector.shape_cast %5 : vector<256xf32> to vector<256x1xf32>
    %7 = vector.broadcast %6 : vector<256x1xf32> to vector<256x256xf32>
    %8 = arith.subf %4, %7 : vector<256x256xf32>
    %9 = math.exp %8 : vector<256x256xf32>
    %cst_6 = arith.constant dense<0.000000e+00> : vector<256xf32>
    %10 = vector.multi_reduction <add>, %9, %cst_6 [1] : vector<256x256xf32> to vector<256xf32>
    %11 = vector.shape_cast %10 : vector<256xf32> to vector<256x1xf32>
    %12 = vector.broadcast %11 : vector<256x1xf32> to vector<256x256xf32>
    %13 = arith.divf %9, %12 : vector<256x256xf32>
    %cst_7 = arith.constant dense<0.000000e+00> : vector<256xf32>
    %14 = vector.multi_reduction <add>, %13, %cst_7 [0] : vector<256x256xf32> to vector<256xf32>
    %15 = vector.shape_cast %14 : vector<256xf32> to vector<1x256xf32>
    %cst_8 = arith.constant 9.99999971E-10 : f32
    %16 = vector.broadcast %cst_8 : f32 to vector<1x256xf32>
    %17 = arith.addf %16, %15 : vector<1x256xf32>
    %18 = vector.broadcast %17 : vector<1x256xf32> to vector<256x256xf32>
    %19 = arith.divf %13, %18 : vector<256x256xf32>
    %c0_9 = arith.constant 0 : index
    %c0_10 = arith.constant 0 : index
    %20 = vector.load %arg3[%c0_9, %c0_10] : memref<128x128xf32, #tpu.memory_space<vmem>>, vector<128x128xf32>
    %cst_11 = arith.constant dense<0.000000e+00> : vector<256x128xf32>
    %21 = tpu.matmul %1, %20, %cst_11 {dimension_numbers = #tpu.dot_dimension_numbers<[1], [0], [0], [1], [0, 0, 1, 1], [], []>} : vector<256x128xf32>, vector<128x128xf32>, vector<256x128xf32> -> vector<256x128xf32>
    %c0_12 = arith.constant 0 : index
    %c0_13 = arith.constant 0 : index
    %22 = vector.load %arg4[%c0_12, %c0_13] : memref<1x128xf32, #tpu.memory_space<vmem>>, vector<1x128xf32>
    %23 = vector.broadcast %22 : vector<1x128xf32> to vector<256x128xf32>
    %24 = arith.addf %21, %23 : vector<256x128xf32>
    %cst_14 = arith.constant dense<0.000000e+00> : vector<256x128xf32>
    %25 = tpu.matmul %19, %24, %cst_14 {dimension_numbers = #tpu.dot_dimension_numbers<[0], [0], [1], [1], [0, 1, 1, 1], [], []>} : vector<256x256xf32>, vector<256x128xf32>, vector<256x128xf32> -> vector<256x128xf32>
    %26 = arith.subf %1, %25 : vector<256x128xf32>
    %c0_15 = arith.constant 0 : index
    %c0_16 = arith.constant 0 : index
    %27 = vector.load %arg5[%c0_15, %c0_16] : memref<128x128xf32, #tpu.memory_space<vmem>>, vector<128x128xf32>
    %cst_17 = arith.constant dense<0.000000e+00> : vector<256x128xf32>
    %28 = tpu.matmul %26, %27, %cst_17 {dimension_numbers = #tpu.dot_dimension_numbers<[1], [0], [0], [1], [0, 0, 1, 1], [], []>} : vector<256x128xf32>, vector<128x128xf32>, vector<256x128xf32> -> vector<256x128xf32>
    %c0_18 = arith.constant 0 : index
    %c0_19 = arith.constant 0 : index
    %29 = vector.load %arg6[%c0_18, %c0_19] : memref<1x128xf32, #tpu.memory_space<vmem>>, vector<1x128xf32>
    %30 = vector.broadcast %29 : vector<1x128xf32> to vector<256x128xf32>
    %31 = arith.addf %28, %30 : vector<256x128xf32>
    %cst_20 = arith.constant 0.000000e+00 : f32
    %32 = vector.broadcast %cst_20 : f32 to vector<256x128xf32>
    %33 = arith.maximumf %31, %32 : vector<256x128xf32>
    %34 = arith.addf %1, %33 : vector<256x128xf32>
    %c0_21 = arith.constant 0 : index
    %c0_22 = arith.constant 0 : index
    %c0_23 = arith.constant 0 : index
    %35 = vector.load %arg7[%c0_21, %c0_22, %c0_23] : memref<1x256x128xf32, #tpu.memory_space<vmem>>, vector<1x256x128xf32>
    %36 = vector.shape_cast %35 : vector<1x256x128xf32> to vector<256x128xf32>
    %37 = vector.shape_cast %34 : vector<256x128xf32> to vector<1x256x128xf32>
    tpu.vector_store %arg7[%c0_21, %c0_22, %c0_23], %37 {strides = array<i32>} : memref<1x256x128xf32, #tpu.memory_space<vmem>>, vector<1x256x128xf32>,
    return
  }
  func.func @transform_0(%arg0: i32) -> (i32, i32, i32) {
    %c0_i32 = arith.constant 0 : i32
    %c0_i32_0 = arith.constant 0 : i32
    %c0_i32_1 = arith.constant 0 : i32
    return %arg0, %c0_i32, %c0_i32_0 : i32, i32, i32
  }
  func.func @transform_1(%arg0: i32) -> (i32, i32) {
    %c0_i32 = arith.constant 0 : i32
    %c0_i32_0 = arith.constant 0 : i32
    %c0_i32_1 = arith.constant 0 : i32
    return %c0_i32, %c0_i32_0 : i32, i32
  }
  func.func @transform_2(%arg0: i32) -> (i32, i32) {
    %c0_i32 = arith.constant 0 : i32
    %c0_i32_0 = arith.constant 0 : i32
    %c0_i32_1 = arith.constant 0 : i32
    return %c0_i32, %c0_i32_0 : i32, i32
  }
  func.func @transform_3(%arg0: i32) -> (i32, i32) {
    %c0_i32 = arith.constant 0 : i32
    %c0_i32_0 = arith.constant 0 : i32
    %c0_i32_1 = arith.constant 0 : i32
    return %c0_i32, %c0_i32_0 : i32, i32
  }
  func.func @transform_4(%arg0: i32) -> (i32, i32) {
    %c0_i32 = arith.constant 0 : i32
    %c0_i32_0 = arith.constant 0 : i32
    %c0_i32_1 = arith.constant 0 : i32
    return %c0_i32, %c0_i32_0 : i32, i32
  }
  func.func @transform_5(%arg0: i32) -> (i32, i32) {
    %c0_i32 = arith.constant 0 : i32
    %c0_i32_0 = arith.constant 0 : i32
    %c0_i32_1 = arith.constant 0 : i32
    return %c0_i32, %c0_i32_0 : i32, i32
  }
  func.func @transform_6(%arg0: i32) -> (i32, i32, i32) {
    %c0_i32 = arith.constant 0 : i32
    %c0_i32_0 = arith.constant 0 : i32
    %c0_i32_1 = arith.constant 0 : i32
    return %arg0, %c0_i32, %c0_i32_0 : i32, i32, i32
  }
}

</mosaic_0001>

<bundles_post_ra>
// kernel: oa_forward.1
= control target key start
LH: loop header
LB: loop body
LE: loop exit
PB: predicated region body
PF: predicated region fallthrough
CT: control target
= control target key end

     0   :  { %s3812_s21 = smov 0   ;;  %s5555_s0 = inlined_call_operand.vmem [shape: f32[2,256,128], index: 0, kind: input, shape index: {}]   ;;  %s5556_s1 = inlined_call_operand.vmem [shape: f32[128,32], index: 1, kind: input, shape index: {}]   ;;  %s5557_s2 = inlined_call_operand.vmem [shape: f32[128,128], index: 2, kind: input, shape index: {}]   ;;  %s5558_s3 = inlined_call_operand.vmem [shape: f32[1,128], index: 3, kind: input, shape index: {}]   ;;  %s5559_s4 = inlined_call_operand.vmem [shape: f32[128,128], index: 4, kind: input, shape index: {}]   ;;  %s5560_s5 = inlined_call_operand.vmem [shape: f32[1,128], index: 5, kind: input, shape index: {}]   ;;  %s5561_s6 = inlined_call_operand.vmem [shape: f32[2,256,128], index: 6, kind: output, shape index: {}]  }
   0x1 LB: > { %s2533_s22 = sadd.s32 4294967295, %s3774_s21   ;;  %p2537_p0 = scmp.ge.s32.totalorder %s3774_s21, 1  ;;  %s3774_s21 = sphi %s3812_s21, %s16_s21  }
   0x2   : > { %p212_p1 = scmp.lt.s32.totalorder %s3774_s21, 3 }
   0x4   : > { %p213_p2 = pnand %p2537_p0, %p212_p1 }
   0x6   : > { %216 = sbr.rel (%p213_p2) target bundleno = 1735 (0x6c7), region = 44 }
   0xd   : > { %v284_v0 = vld [vmem:[%s5556_s1] sm:$0xff]  ;;  %v285_v1 = vld [vmem:[%s5556_s1 + $0x8] sm:$0xff]  ;;  %v286_v2 = vld [vmem:[%s5556_s1 + $0x10] sm:$0xff]  ;;  %p242_p3 = scmp.lt.s32.totalorder %s2533_s22, 1  ;;  %vm525_vm0 = vcmask 261120  }
   0xe   : > { %v3092_v3 = vpack.c.bf16 %v285_v1, %v284_v0  ;;  %v287_v4 = vld [vmem:[%s5556_s1 + $0x18] sm:$0xff]  ;;  %v288_v6 = vld [vmem:[%s5556_s1 + $0x20] sm:$0xff]  ;;  %v289_v7 = vld [vmem:[%s5556_s1 + $0x28] sm:$0xff] }
   0xf   : > { %v3096_v5 = vpack.c.bf16 %v287_v4, %v286_v2  ;;  %s5745_s22 = smov (!%p242_p3, %s2533_s22), 1  ;;  %v3100_v8 = vpack.c.bf16 %v289_v7, %v288_v6  ;;  %v290_v9 = vld [vmem:[%s5556_s1 + $0x30] sm:$0xff]  ;;  %v291_v10 = vld [vmem:[%s5556_s1 + $0x38] sm:$0xff]  ;;  %v292_v13 = vld [vmem:[%s5556_s1 + $0x40] sm:$0xff] }
  0x10   : > { %3093 = vmatprep.subr.bf16.mxu0 %v3092_v3  ;;  %s2610_s11 = sshll.u32 %s5745_s22, 8  ;;  %v3104_v12 = vpack.c.bf16 %v291_v10, %v290_v9  ;;  %v293_v14 = vld [vmem:[%s5556_s1 + $0x48] sm:$0xff]  ;;  %v294_v16 = vld [vmem:[%s5556_s1 + $0x50] sm:$0xff]  ;;  %v295_v17 = vld [vmem:[%s5556_s1 + $0x58] sm:$0xff] }
  0x11   : > { %3095 = vmatpush3.bf16.msra.mxu0 %v3092_v3  ;;  %s3846_s14 = scalar_lea.vmem %s5555_s0, %s2610_s11  ;;  %v3108_v15 = vpack.c.bf16 %v293_v14, %v292_v13  ;;  %v3112_v18 = vpack.c.bf16 %v295_v17, %v294_v16  ;;  %v296_v19 = vld [vmem:[%s5556_s1 + $0x60] sm:$0xff]  ;;  %v297_v20 = vld [vmem:[%s5556_s1 + $0x68] sm:$0xff]  ;;  %v298_v22 = vld [vmem:[%s5556_s1 + $0x70] sm:$0xff]  ;;  %s5456_s26 = scalar_lea.vmem %s5561_s6, %s2610_s11 }
  0x12   : > { %3097 = vmatprep.subr.bf16.mxu0 %v3096_v5  ;;  %v3855_v11 = vld [vmem:[%s3846_s14] sm:$0xff]  ;;  %v3116_v21 = vpack.c.bf16 %v297_v20, %v296_v19  ;;  %v299_v23 = vld [vmem:[%s5556_s1 + $0x78] sm:$0xff]  ;;  %v3883_v25 = vld [vmem:[%s3846_s14 + $0x8] sm:$0xff] }
  0x13   : > { %2884 = vmatprep.mubr.f32.mxu0 %v3855_v11  ;;  %v3120_v24 = vpack.c.bf16 %v299_v23, %v298_v22  ;;  %v3886_v26 = vld [vmem:[%s3846_s14 + $0x10] sm:$0xff]  ;;  %v3891_v27 = vld [vmem:[%s3846_s14 + $0x18] sm:$0xff]  ;;  %v3894_v28 = vld [vmem:[%s3846_s14 + $0x20] sm:$0xff] }
  0x14   : > { %v3899_v29 = vld [vmem:[%s3846_s14 + $0x28] sm:$0xff]  ;;  %v3902_v30 = vld [vmem:[%s3846_s14 + $0x30] sm:$0xff]  ;;  %v3907_v31 = vld [vmem:[%s3846_s14 + $0x38] sm:$0xff] }
  0x15   : > { %3099 = vmatpush3.bf16.msra.mxu0 %v3096_v5  ;;  %v3910_v32 = vld [vmem:[%s3846_s14 + $0x40] sm:$0xff]  ;;  %v261_v33 = vld [vmem:[%s3846_s14 + $0x48] sm:$0xff]  ;;  %v262_v34 = vld [vmem:[%s3846_s14 + $0x50] sm:$0xff] }
  0x16   : > { %3101 = vmatprep.subr.bf16.mxu0 %v3100_v8  ;;  %v263_v35 = vld [vmem:[%s3846_s14 + $0x58] sm:$0xff]  ;;  %v264_v36 = vld [vmem:[%s3846_s14 + $0x60] sm:$0xff]  ;;  %v265_v37 = vld [vmem:[%s3846_s14 + $0x68] sm:$0xff] }
  0x17   : > { %v266_v38 = vld [vmem:[%s3846_s14 + $0x70] sm:$0xff]  ;;  %v267_v39 = vld [vmem:[%s3846_s14 + $0x78] sm:$0xff]  ;;  %v268_v40 = vld [vmem:[%s3846_s14 + $0x80] sm:$0xff] }
  0x18   : > { %v269_v41 = vld [vmem:[%s3846_s14 + $0x88] sm:$0xff]  ;;  %v270_v42 = vld [vmem:[%s3846_s14 + $0x90] sm:$0xff]  ;;  %v271_v43 = vld [vmem:[%s3846_s14 + $0x98] sm:$0xff] }
  0x19   : > { %3103 = vmatpush3.bf16.msra.mxu0 %v3100_v8  ;;  %v272_v44 = vld [vmem:[%s3846_s14 + $0xa0] sm:$0xff]  ;;  %v273_v45 = vld [vmem:[%s3846_s14 + $0xa8] sm:$0xff]  ;;  %v274_v46 = vld [vmem:[%s3846_s14 + $0xb0] sm:$0xff] }
  0x1a   : > { %3105 = vmatprep.subr.bf16.mxu0 %v3104_v12  ;;  %v275_v47 = vld [vmem:[%s3846_s14 + $0xb8] sm:$0xff]  ;;  %v276_v48 = vld [vmem:[%s3846_s14 + $0xc0] sm:$0xff]  ;;  %v277_v49 = vld [vmem:[%s3846_s14 + $0xc8] sm:$0xff] }
  0x1b   : > { %v278_v50 = vld [vmem:[%s3846_s14 + $0xd0] sm:$0xff]  ;;  %v279_v51 = vld [vmem:[%s3846_s14 + $0xd8] sm:$0xff]  ;;  %v280_v52 = vld [vmem:[%s3846_s14 + $0xe0] sm:$0xff] }
  0x1c   : > { %v281_v53 = vld [vmem:[%s3846_s14 + $0xe8] sm:$0xff]  ;;  %v282_v54 = vld [vmem:[%s3846_s14 + $0xf0] sm:$0xff]  ;;  %v283_v55 = vld [vmem:[%s3846_s14 + $0xf8] sm:$0xff] }
  0x1d   : > { %3107 = vmatpush3.bf16.msra.mxu0 %v3104_v12  ;;  %vm3994_vm1 = vmpackc.low %vm525_vm0, %vm525_vm0 }
  0x1e   : > { %3109 = vmatprep.subr.bf16.mxu0 %v3108_v15 }
  0x21   : > { %3111 = vmatpush3.bf16.msra.mxu0 %v3108_v15 }
  0x22   : > { %3113 = vmatprep.subr.bf16.mxu0 %v3112_v18 }
  0x25   : > { %3115 = vmatpush3.bf16.msra.mxu0 %v3112_v18 }
  0x26   : > { %3117 = vmatprep.subr.bf16.mxu0 %v3116_v21 }
  0x29   : > { %3119 = vmatpush3.bf16.msra.mxu0 %v3116_v21 }
  0x2a   : > { %3121 = vmatprep.subr.bf16.mxu0 %v3120_v24 }
  0x2d   : > { %3123 = vmatpush3.bf16.msra.mxu0 %v3120_v24 }
  0x30   : > { %2885 = vmatmul.mubr.f32.vlgmr.msra.gmra.mrb[0].mxu0 %v3883_v25 }
  0x31   : > { %2887 = vmatprep.mubr.f32.mxu0 %v3886_v26 }
  0x34   : > { %2888 = vmatmul.mubr.f32.gmra.mrb[2].mxu0 %v3891_v27 }
  0x35   : > { %2890 = vmatprep.mubr.f32.mxu0 %v3894_v28 }
  0x38   : > { %2891 = vmatmul.mubr.f32.gmra.mrb[4].mxu0 %v3899_v29 }
  0x39   : > { %2893 = vmatprep.mubr.f32.mxu0 %v3902_v30 }
  0x3c   : > { %2894 = vmatmul.mubr.f32.gmra.mrb[6].mxu0 %v3907_v31 }
  0x3d   : > { %2896 = vmatprep.mubr.f32.mxu0 %v3910_v32 }
  0x40   : > { %2897 = vmatmul.mubr.f32.gmra.mrb[8].mxu0 %v261_v33 }
  0x41   : > { %2899 = vmatprep.mubr.f32.mxu0 %v262_v34 }
  0x44   : > { %2900 = vmatmul.mubr.f32.gmra.mrb[10].mxu0 %v263_v35 }
  0x45   : > { %2902 = vmatprep.mubr.f32.mxu0 %v264_v36 }
  0x48   : > { %2903 = vmatmul.mubr.f32.gmra.mrb[12].mxu0 %v265_v37 }
  0x49   : > { %2905 = vmatprep.mubr.f32.mxu0 %v266_v38 }
  0x4c   : > { %2906 = vmatmul.mubr.f32.gmra.mrb[14].mxu0 %v267_v39 }
  0x4d   : > { %2908 = vmatprep.mubr.f32.mxu0 %v268_v40 }
  0x50   : > { %2909 = vmatmul.mubr.f32.gmra.mrb[16].mxu0 %v269_v41 }
  0x51   : > { %2911 = vmatprep.mubr.f32.mxu0 %v270_v42 }
  0x54   : > { %2912 = vmatmul.mubr.f32.gmra.mrb[18].mxu0 %v271_v43 }
  0x55   : > { %2914 = vmatprep.mubr.f32.mxu0 %v272_v44 }
  0x58   : > { %2915 = vmatmul.mubr.f32.gmra.mrb[20].mxu0 %v273_v45 }
  0x59   : > { %2917 = vmatprep.mubr.f32.mxu0 %v274_v46 }
  0x5c   : > { %2918 = vmatmul.mubr.f32.gmra.mrb[22].mxu0 %v275_v47 }
  0x5d   : > { %2920 = vmatprep.mubr.f32.mxu0 %v276_v48 }
  0x60   : > { %2921 = vmatmul.mubr.f32.gmra.mrb[24].mxu0 %v277_v49 }
  0x61   : > { %2923 = vmatprep.mubr.f32.mxu0 %v278_v50 }
  0x64   : > { %2924 = vmatmul.mubr.f32.gmra.mrb[26].mxu0 %v279_v51 }
  0x65   : > { %2926 = vmatprep.mubr.f32.mxu0 %v280_v52 }
  0x68   : > { %2927 = vmatmul.mubr.f32.gmra.mrb[28].mxu0 %v281_v53 }
  0x69   : > { %2929 = vmatprep.mubr.f32.mxu0 %v282_v54 }
  0x6c   : > { %2930 = vmatmul.mubr.f32.gmra.mrb[30].mxu0 %v283_v55 }
  0x6d   : > { %2964 = vmatprep.mubr.f32.mxu0 %v3855_v11 }
 0x103   : > { %v3938_v56 = vpop.f32.mrb[0].mxu0 }
 0x104   : > { %v3940_v57 = vpop.f32.mrb[1].mxu0 }
 0x105   : > { %v3127_v58 = vpack.c.bf16 %v3938_v56, %v3940_v57  ;;  %2692 = vmatprep.mubr.msk.f32.mxu1 %vm525_vm0, %v3940_v57 }
 0x107   : > { %v3946_v59 = vpop.f32.mrb[2].mxu0 }
 0x108   : > { %v3948_v60 = vpop.f32.mrb[3].mxu0 }
 0x109   : > { %v3133_v61 = vpack.c.bf16 %v3946_v59, %v3948_v60 }
 0x10b   : > { %v3952_v62 = vpop.f32.mrb[4].mxu0 }
 0x10c   : > { %v3954_v63 = vpop.f32.mrb[5].mxu0 }
 0x10d   : > { %v3139_v0 = vpack.c.bf16 %v3952_v62, %v3954_v63 }
 0x10f   : > { %v3958_v1 = vpop.f32.mrb[6].mxu0 }
 0x110   : > { %v3960_v2 = vpop.f32.mrb[7].mxu0 }
 0x111   : > { %v3145_v3 = vpack.c.bf16 %v3958_v1, %v3960_v2 }
 0x113   : > { %v3964_v4 = vpop.f32.mrb[8].mxu0 }
 0x114   : > { %v3966_v5 = vpop.f32.mrb[9].mxu0 }
 0x115   : > { %v3151_v6 = vpack.c.bf16 %v3964_v4, %v3966_v5 }
 0x117   : > { %v3970_v7 = vpop.f32.mrb[10].mxu0 }
 0x118   : > { %v3972_v8 = vpop.f32.mrb[11].mxu0 }
 0x119   : > { %v3157_v9 = vpack.c.bf16 %v3970_v7, %v3972_v8 }
 0x11b   : > { %v3976_v10 = vpop.f32.mrb[12].mxu0 }
 0x11c   : > { %v3978_v11 = vpop.f32.mrb[13].mxu0 }
 0x11d   : > { %v3163_v12 = vpack.c.bf16 %v3976_v10, %v3978_v11 }
 0x11f   : > { %v3982_v13 = vpop.f32.mrb[14].mxu0 }
 0x120   : > { %v3984_v14 = vpop.f32.mrb[15].mxu0 }
 0x121   : > { %v3169_v15 = vpack.c.bf16 %v3982_v13, %v3984_v14 }
 0x123   : > { %v3988_v16 = vpop.f32.mrb[16].mxu0 }
 0x124   : > { %v3990_v17 = vpop.f32.mrb[17].mxu0 }
 0x125   : > { %v3124_v19 = vpack.c.bf16 %v3988_v16, %v3990_v17 }
 0x127   : > { %3126 = vmatprep.subr.msk.bf16.mxu1 %vm3994_vm1, %v3124_v19  ;;  %v4002_v20 = vpop.f32.mrb[18].mxu0 }
 0x128   : > { %3129 = vmatpush3.bf16.xpose.msk.msra.mxu1 %vm3994_vm1, %v3127_v58  ;;  %v4006_v21 = vpop.f32.mrb[19].mxu0 }
 0x129   : > { %v3130_v22 = vpack.c.bf16 %v4002_v20, %v4006_v21 }
 0x12b   : > { %3132 = vmatprep.subr.msk.bf16.mxu1 %vm3994_vm1, %v3130_v22  ;;  %v4012_v23 = vpop.f32.mrb[20].mxu0 }
 0x12c   : > { %v4014_v24 = vpop.f32.mrb[21].mxu0 }
 0x12d   : > { %v3136_v33 = vpack.c.bf16 %v4012_v23, %v4014_v24 }
 0x12f   : > { %v4018_v34 = vpop.f32.mrb[22].mxu0 }
 0x130   : > { %3135 = vmatpush3.bf16.xpose.msk.msra.mxu1 %vm3994_vm1, %v3133_v61  ;;  %v4022_v35 = vpop.f32.mrb[23].mxu0 }
 0x131   : > { %3138 = vmatprep.subr.msk.bf16.mxu1 %vm3994_vm1, %v3136_v33  ;;  %v3142_v36 = vpack.c.bf16 %v4018_v34, %v4022_v35 }
 0x133   : > { %v4028_v37 = vpop.f32.mrb[24].mxu0 }
 0x134   : > { %v4030_v38 = vpop.f32.mrb[25].mxu0 }
 0x135   : > { %v3148_v39 = vpack.c.bf16 %v4028_v37, %v4030_v38 }
 0x137   : > { %v4034_v40 = vpop.f32.mrb[26].mxu0 }
 0x138   : > { %3141 = vmatpush3.bf16.xpose.msk.msra.mxu1 %vm3994_vm1, %v3139_v0  ;;  %v4038_v41 = vpop.f32.mrb[27].mxu0 }
 0x139   : > { %3144 = vmatprep.subr.msk.bf16.mxu1 %vm3994_vm1, %v3142_v36  ;;  %v3154_v42 = vpack.c.bf16 %v4034_v40, %v4038_v41 }
 0x13b   : > { %v4044_v43 = vpop.f32.mrb[28].mxu0 }
 0x13c   : > { %v4046_v44 = vpop.f32.mrb[29].mxu0 }
 0x13d   : > { %v3160_v45 = vpack.c.bf16 %v4044_v43, %v4046_v44 }
 0x13f   : > { %v4050_v46 = vpop.f32.mrb[30].mxu0 }
 0x140   : > { %3147 = vmatpush3.bf16.xpose.msk.msra.mxu1 %vm3994_vm1, %v3145_v3  ;;  %v4054_v47 = vpop.f32.mrb[31].mxu0 }
 0x141   : > { %3150 = vmatprep.subr.msk.bf16.mxu1 %vm3994_vm1, %v3148_v39  ;;  %v3166_v48 = vpack.c.bf16 %v4050_v46, %v4054_v47 }
 0x148   : > { %3153 = vmatpush3.bf16.xpose.msk.msra.mxu1 %vm3994_vm1, %v3151_v6 }
 0x149   : > { %3156 = vmatprep.subr.msk.bf16.mxu1 %vm3994_vm1, %v3154_v42 }
 0x150   : > { %3159 = vmatpush3.bf16.xpose.msk.msra.mxu1 %vm3994_vm1, %v3157_v9 }
 0x151   : > { %3162 = vmatprep.subr.msk.bf16.mxu1 %vm3994_vm1, %v3160_v45 }
 0x158   : > { %3165 = vmatpush3.bf16.xpose.msk.msra.mxu1 %vm3994_vm1, %v3163_v12 }
 0x159   : > { %3168 = vmatprep.subr.msk.bf16.mxu1 %vm3994_vm1, %v3166_v48 }
 0x160   : > { %3171 = vmatpush3.bf16.xpose.msk.msra.mxu1 %vm3994_vm1, %v3169_v15 }
 0x167   : > { %2693 = vmatmul.mubr.msk.f32.vlgmr.msra.gmra.mrb[0].mxu1 %vm525_vm0, %v3940_v57 }
 0x168   : > { %2694 = vmatprep.mubr.msk.f32.mxu1 %vm525_vm0, %v3938_v56 }
 0x16b   : > { %2695 = vmatmul.mubr.msk.f32.gmra.mrb[2].mxu1 %vm525_vm0, %v3938_v56 }
 0x16c   : > { %2696 = vmatprep.mubr.msk.f32.mxu1 %vm525_vm0, %v3948_v60 }
 0x16f   : > { %2697 = vmatmul.mubr.msk.f32.gmra.mrb[4].mxu1 %vm525_vm0, %v3948_v60 }
 0x170   : > { %2698 = vmatprep.mubr.msk.f32.mxu1 %vm525_vm0, %v3946_v59 }
 0x173   : > { %2699 = vmatmul.mubr.msk.f32.gmra.mrb[6].mxu1 %vm525_vm0, %v3946_v59 }
 0x174   : > { %2700 = vmatprep.mubr.msk.f32.mxu1 %vm525_vm0, %v3954_v63 }
 0x177   : > { %2701 = vmatmul.mubr.msk.f32.gmra.mrb[8].mxu1 %vm525_vm0, %v3954_v63 }
 0x178   : > { %2702 = vmatprep.mubr.msk.f32.mxu1 %vm525_vm0, %v3952_v62 }
 0x17b   : > { %2703 = vmatmul.mubr.msk.f32.gmra.mrb[10].mxu1 %vm525_vm0, %v3952_v62 }
 0x17c   : > { %2704 = vmatprep.mubr.msk.f32.mxu1 %vm525_vm0, %v3960_v2 }
 0x17f   : > { %2705 = vmatmul.mubr.msk.f32.gmra.mrb[12].mxu1 %vm525_vm0, %v3960_v2 }
 0x180   : > { %2706 = vmatprep.mubr.msk.f32.mxu1 %vm525_vm0, %v3958_v1 }
 0x183   : > { %2707 = vmatmul.mubr.msk.f32.gmra.mrb[14].mxu1 %vm525_vm0, %v3958_v1 }
 0x184   : > { %2708 = vmatprep.mubr.msk.f32.mxu1 %vm525_vm0, %v3966_v5 }
 0x187   : > { %2709 = vmatmul.mubr.msk.f32.gmra.mrb[16].mxu1 %vm525_vm0, %v3966_v5 }
 0x188   : > { %2710 = vmatprep.mubr.msk.f32.mxu1 %vm525_vm0, %v3964_v4 }
 0x18b   : > { %2711 = vmatmul.mubr.msk.f32.gmra.mrb[18].mxu1 %vm525_vm0, %v3964_v4 }
 0x18c   : > { %2712 = vmatprep.mubr.msk.f32.mxu1 %vm525_vm0, %v3972_v8 }
 0x18f   : > { %2713 = vmatmul.mubr.msk.f32.gmra.mrb[20].mxu1 %vm525_vm0, %v3972_v8 }
 0x190   : > { %2714 = vmatprep.mubr.msk.f32.mxu1 %vm525_vm0, %v3970_v7 }
 0x193   : > { %2715 = vmatmul.mubr.msk.f32.gmra.mrb[22].mxu1 %vm525_vm0, %v3970_v7 }
 0x194   : > { %2716 = vmatprep.mubr.msk.f32.mxu1 %vm525_vm0, %v3978_v11 }
 0x197   : > { %2717 = vmatmul.mubr.msk.f32.gmra.mrb[24].mxu1 %vm525_vm0, %v3978_v11 }
 0x198   : > { %2718 = vmatprep.mubr.msk.f32.mxu1 %vm525_vm0, %v3976_v10 }
 0x19b   : > { %2719 = vmatmul.mubr.msk.f32.gmra.mrb[26].mxu1 %vm525_vm0, %v3976_v10 }
 0x19c   : > { %2720 = vmatprep.mubr.msk.f32.mxu1 %vm525_vm0, %v3984_v14 }
 0x19f   : > { %2721 = vmatmul.mubr.msk.f32.gmra.mrb[28].mxu1 %vm525_vm0, %v3984_v14 }
 0x1a0   : > { %2722 = vmatprep.mubr.msk.f32.mxu1 %vm525_vm0, %v3982_v13 }
 0x1a3   : > { %2723 = vmatmul.mubr.msk.f32.gmra.mrb[30].mxu1 %vm525_vm0, %v3982_v13 }
 0x1a4   : > { %2724 = vmatprep.mubr.msk.f32.mxu1 %vm525_vm0, %v3990_v17 }
 0x1a7   : > { %2725 = vmatmul.mubr.msk.f32.gmra.mrb[32].mxu1 %vm525_vm0, %v3990_v17 }
 0x1a8   : > { %2726 = vmatprep.mubr.msk.f32.mxu1 %vm525_vm0, %v3988_v16 }
 0x1ab   : > { %2727 = vmatmul.mubr.msk.f32.gmra.mrb[34].mxu1 %vm525_vm0, %v3988_v16 }
 0x1ac   : > { %2728 = vmatprep.mubr.msk.f32.mxu1 %vm525_vm0, %v4006_v21 }
 0x1af   : > { %2729 = vmatmul.mubr.msk.f32.gmra.mrb[36].mxu1 %vm525_vm0, %v4006_v21 }
 0x1b0   : > { %2730 = vmatprep.mubr.msk.f32.mxu1 %vm525_vm0, %v4002_v20 }
 0x1b3   : > { %2731 = vmatmul.mubr.msk.f32.gmra.mrb[38].mxu1 %vm525_vm0, %v4002_v20 }
 0x1b4   : > { %2732 = vmatprep.mubr.msk.f32.mxu1 %vm525_vm0, %v4014_v24 }
 0x1b7   : > { %2733 = vmatmul.mubr.msk.f32.gmra.mrb[40].mxu1 %vm525_vm0, %v4014_v24 }
 0x1b8   : > { %2734 = vmatprep.mubr.msk.f32.mxu1 %vm525_vm0, %v4012_v23 }
 0x1bb   : > { %2735 = vmatmul.mubr.msk.f32.gmra.mrb[42].mxu1 %vm525_vm0, %v4012_v23 }
 0x1bc   : > { %2736 = vmatprep.mubr.msk.f32.mxu1 %vm525_vm0, %v4022_v35 }
 0x1bf   : > { %2737 = vmatmul.mubr.msk.f32.gmra.mrb[44].mxu1 %vm525_vm0, %v4022_v35 }
 0x1c0   : > { %2738 = vmatprep.mubr.msk.f32.mxu1 %vm525_vm0, %v4018_v34 }
 0x1c3   : > { %2739 = vmatmul.mubr.msk.f32.gmra.mrb[46].mxu1 %vm525_vm0, %v4018_v34 }
 0x1c4   : > { %2740 = vmatprep.mubr.msk.f32.mxu1 %vm525_vm0, %v4030_v38 }
 0x1c7   : > { %2741 = vmatmul.mubr.msk.f32.gmra.mrb[48].mxu1 %vm525_vm0, %v4030_v38 }
 0x1c8   : > { %2742 = vmatprep.mubr.msk.f32.mxu1 %vm525_vm0, %v4028_v37 }
 0x1cb   : > { %2743 = vmatmul.mubr.msk.f32.gmra.mrb[50].mxu1 %vm525_vm0, %v4028_v37 }
 0x1cc   : > { %2744 = vmatprep.mubr.msk.f32.mxu1 %vm525_vm0, %v4038_v41 }
 0x1cf   : > { %2745 = vmatmul.mubr.msk.f32.gmra.mrb[52].mxu1 %vm525_vm0, %v4038_v41 }
 0x1d0   : > { %2746 = vmatprep.mubr.msk.f32.mxu1 %vm525_vm0, %v4034_v40 }
 0x1d3   : > { %2747 = vmatmul.mubr.msk.f32.gmra.mrb[54].mxu1 %vm525_vm0, %v4034_v40 }
 0x1d4   : > { %2748 = vmatprep.mubr.msk.f32.mxu1 %vm525_vm0, %v4046_v44 }
 0x1d7   : > { %2749 = vmatmul.mubr.msk.f32.gmra.mrb[56].mxu1 %vm525_vm0, %v4046_v44 }
 0x1d8   : > { %2750 = vmatprep.mubr.msk.f32.mxu1 %vm525_vm0, %v4044_v43 }
 0x1db   : > { %2751 = vmatmul.mubr.msk.f32.gmra.mrb[58].mxu1 %vm525_vm0, %v4044_v43 }
 0x1dc   : > { %2752 = vmatprep.mubr.msk.f32.mxu1 %vm525_vm0, %v4054_v47 }
 0x1df   : > { %2753 = vmatmul.mubr.msk.f32.gmra.mrb[60].mxu1 %vm525_vm0, %v4054_v47 }
 0x1e0   : > { %2754 = vmatprep.mubr.msk.f32.mxu1 %vm525_vm0, %v4050_v46 }
 0x1e3   : > { %2755 = vmatmul.mubr.msk.f32.gmra.mrb[62].mxu1 %vm525_vm0, %v4050_v46 }
 0x23a   : > { %v4200_v49 = vpop.f32.mrb[0].mxu1 }
 0x23b   : > { %v4202_v50 = vpop.f32.mrb[1].mxu1 }
 0x23c   : > { %v879_v51 = vmax.f32 %v4200_v49, %v4202_v50 }
 0x23e   : > { %880 = vmax.xlane.f32.xlu0 %v879_v51  ;;  %v4206_v52 = vpop.f32.mrb[2].mxu1 }
 0x23f   : > { %v4208_v53 = vpop.f32.mrb[3].mxu1 }
 0x240   : > { %v882_v54 = vmax.f32 %v4206_v52, %v4208_v53 }
 0x242   : > { %883 = vmax.xlane.f32.xlu0 %v882_v54  ;;  %v4212_v55 = vpop.f32.mrb[4].mxu1 }
 0x243   : > { %v4214_v56 = vpop.f32.mrb[5].mxu1 }
 0x244   : > { %v885_v57 = vmax.f32 %v4212_v55, %v4214_v56 }
 0x246   : > { %886 = vmax.xlane.f32.xlu1 %v885_v57  ;;  %v4218_v58 = vpop.f32.mrb[6].mxu1 }
 0x247   : > { %v4220_v59 = vpop.f32.mrb[7].mxu1 }
 0x248   : > { %v888_v60 = vmax.f32 %v4218_v58, %v4220_v59 }
 0x24a   : > { %889 = vmax.xlane.f32.xlu1 %v888_v60  ;;  %v4224_v61 = vpop.f32.mrb[8].mxu1 }
 0x24b   : > { %v4226_v62 = vpop.f32.mrb[9].mxu1 }
 0x24c   : > { %v891_v63 = vmax.f32 %v4224_v61, %v4226_v62 }
 0x24e   : > { %892 = vmax.xlane.f32.xlu0 %v891_v63  ;;  %v4230_v0 = vpop.f32.mrb[10].mxu1 }
 0x24f   : > { %v4232_v1 = vpop.f32.mrb[11].mxu1 }
 0x250   : > { %v894_v2 = vmax.f32 %v4230_v0, %v4232_v1 }
 0x252   : > { %895 = vmax.xlane.f32.xlu1 %v894_v2  ;;  %v4236_v3 = vpop.f32.mrb[12].mxu1 }
 0x253   : > { %v4238_v4 = vpop.f32.mrb[13].mxu1 }
 0x254   : > { %v897_v5 = vmax.f32 %v4236_v3, %v4238_v4 }
 0x256   : > { %898 = vmax.xlane.f32.xlu0 %v897_v5  ;;  %v4242_v6 = vpop.f32.mrb[14].mxu1 }
 0x257   : > { %v4244_v7 = vpop.f32.mrb[15].mxu1 }
 0x258   : > { %v900_v8 = vmax.f32 %v4242_v6, %v4244_v7 }
 0x25a   : > { %901 = vmax.xlane.f32.xlu1 %v900_v8  ;;  %v4248_v9 = vpop.f32.mrb[16].mxu1 }
 0x25b   : > { %v4250_v10 = vpop.f32.mrb[17].mxu1 }
 0x25c   : > { %v903_v11 = vmax.f32 %v4248_v9, %v4250_v10 }
 0x25e   : > { %904 = vmax.xlane.f32.xlu0 %v903_v11  ;;  %v4254_v12 = vpop.f32.mrb[18].mxu1 }
 0x25f   : > { %v4256_v13 = vpop.f32.mrb[19].mxu1 }
 0x260   : > { %v906_v14 = vmax.f32 %v4254_v12, %v4256_v13 }
 0x262   : > { %907 = vmax.xlane.f32.xlu1 %v906_v14  ;;  %v4260_v15 = vpop.f32.mrb[20].mxu1 }
 0x263   : > { %v4262_v16 = vpop.f32.mrb[21].mxu1 }
 0x264   : > { %v909_v17 = vmax.f32 %v4260_v15, %v4262_v16 }
 0x266   : > { %910 = vmax.xlane.f32.xlu0 %v909_v17  ;;  %v4266_v18 = vpop.f32.mrb[22].mxu1 }
 0x267   : > { %v4268_v19 = vpop.f32.mrb[23].mxu1 }
 0x268   : > { %v912_v20 = vmax.f32 %v4266_v18, %v4268_v19 }
 0x26a   : > { %913 = vmax.xlane.f32.xlu1 %v912_v20  ;;  %v4272_v21 = vpop.f32.mrb[24].mxu1 }
 0x26b   : > { %v4274_v22 = vpop.f32.mrb[25].mxu1 }
 0x26c   : > { %v915_v23 = vmax.f32 %v4272_v21, %v4274_v22 }
 0x26e   : > { %916 = vmax.xlane.f32.xlu0 %v915_v23  ;;  %v4278_v24 = vpop.f32.mrb[26].mxu1 }
 0x26f   : > { %v4280_v33 = vpop.f32.mrb[27].mxu1 }
 0x270   : > { %v918_v34 = vmax.f32 %v4278_v24, %v4280_v33 }
 0x272   : > { %919 = vmax.xlane.f32.xlu1 %v918_v34  ;;  %v4284_v35 = vpop.f32.mrb[28].mxu1 }
 0x273   : > { %v4286_v36 = vpop.f32.mrb[29].mxu1 }
 0x274   : > { %v921_v37 = vmax.f32 %v4284_v35, %v4286_v36 }
 0x276   : > { %922 = vmax.xlane.f32.xlu0 %v921_v37  ;;  %v4290_v38 = vpop.f32.mrb[30].mxu1 }
 0x277   : > { %v4292_v39 = vpop.f32.mrb[31].mxu1 }
 0x278   : > { %v924_v40 = vmax.f32 %v4290_v38, %v4292_v39 }
 0x27a   : > { %925 = vmax.xlane.f32.xlu1 %v924_v40  ;;  %v4296_v41 = vpop.f32.mrb[32].mxu1 }
 0x27b   : > { %v4298_v42 = vpop.f32.mrb[33].mxu1 }
 0x27c   : > { %v927_v43 = vmax.f32 %v4296_v41, %v4298_v42 }
 0x27e   : > { %928 = vmax.xlane.f32.xlu0 %v927_v43  ;;  %v4302_v44 = vpop.f32.mrb[34].mxu1 }
 0x27f   : > { %v4304_v45 = vpop.f32.mrb[35].mxu1 }
 0x280   : > { %v930_v46 = vmax.f32 %v4302_v44, %v4304_v45 }
 0x282   : > { %931 = vmax.xlane.f32.xlu1 %v930_v46  ;;  %v4308_v47 = vpop.f32.mrb[36].mxu1 }
 0x283   : > { %v4310_v48 = vpop.f32.mrb[37].mxu1 }
 0x284   : > { %v933_v51 = vmax.f32 %v4308_v47, %v4310_v48 }
 0x286   : > { %934 = vmax.xlane.f32.xlu0 %v933_v51  ;;  %v4314_v54 = vpop.f32.mrb[38].mxu1 }
 0x287   : > { %v4316_v57 = vpop.f32.mrb[39].mxu1 }
 0x288   : > { %v936_v60 = vmax.f32 %v4314_v54, %v4316_v57 }
 0x28a   : > { %937 = vmax.xlane.f32.xlu1 %v936_v60  ;;  %v4320_v63 = vpop.f32.mrb[40].mxu1 }
 0x28b   : > { %v4322_v2 = vpop.f32.mrb[41].mxu1 }
 0x28c   : > { %v939_v5 = vmax.f32 %v4320_v63, %v4322_v2 }
 0x28e   : > { %940 = vmax.xlane.f32.xlu0 %v939_v5  ;;  %v4326_v8 = vpop.f32.mrb[42].mxu1 }
 0x28f   : > { %v4328_v11 = vpop.f32.mrb[43].mxu1 }
 0x290   : > { %5625 = vst [vmem:[#allocation2_spill] sm:$0xff] %v4328_v11  ;;  %v942_v14 = vmax.f32 %v4326_v8, %v4328_v11 }
 0x292   : > { %943 = vmax.xlane.f32.xlu1 %v942_v14  ;;  %v4332_v17 = vpop.f32.mrb[44].mxu1 }
 0x293   : > { %5626 = vst [vmem:[#allocation3_spill] sm:$0xff] %v4332_v17  ;;  %v4334_v20 = vpop.f32.mrb[45].mxu1 }
 0x294   : > { %5627 = vst [vmem:[#allocation4_spill] sm:$0xff] %v4334_v20  ;;  %v945_v23 = vmax.f32 %v4332_v17, %v4334_v20 }
 0x296   : > { %946 = vmax.xlane.f32.xlu0 %v945_v23  ;;  %v4338_v34 = vpop.f32.mrb[46].mxu1 }
 0x297   : > { %5628 = vst [vmem:[#allocation5_spill] sm:$0xff] %v4338_v34  ;;  %v4340_v37 = vpop.f32.mrb[47].mxu1 }
 0x298   : > { %5629 = vst [vmem:[#allocation6_spill] sm:$0xff] %v4340_v37  ;;  %v948_v40 = vmax.f32 %v4338_v34, %v4340_v37 }
 0x29a   : > { %949 = vmax.xlane.f32.xlu1 %v948_v40  ;;  %v4344_v43 = vpop.f32.mrb[48].mxu1 }
 0x29b   : > { %5630 = vst [vmem:[#allocation7_spill] sm:$0xff] %v4344_v43  ;;  %v4346_v46 = vpop.f32.mrb[49].mxu1 }
 0x29c   : > { %5631 = vst [vmem:[#allocation8_spill] sm:$0xff] %v4346_v46  ;;  %v951_v51 = vmax.f32 %v4344_v43, %v4346_v46 }
 0x29e   : > { %952 = vmax.xlane.f32.xlu0 %v951_v51  ;;  %v4350_v60 = vpop.f32.mrb[50].mxu1 }
 0x29f   : > { %5632 = vst [vmem:[#allocation9_spill] sm:$0xff] %v4350_v60  ;;  %v4352_v5 = vpop.f32.mrb[51].mxu1 }
 0x2a0   : > { %5633 = vst [vmem:[#allocation10_spill] sm:$0xff] %v4352_v5  ;;  %v954_v14 = vmax.f32 %v4350_v60, %v4352_v5 }
 0x2a2   : > { %955 = vmax.xlane.f32.xlu1 %v954_v14  ;;  %v4356_v23 = vpop.f32.mrb[52].mxu1 }
 0x2a3   : > { %5634 = vst [vmem:[#allocation11_spill] sm:$0xff] %v4356_v23  ;;  %v4358_v37 = vpop.f32.mrb[53].mxu1 }
 0x2a4   : > { %5635 = vst [vmem:[#allocation12_spill] sm:$0xff] %v4358_v37  ;;  %v957_v40 = vmax.f32 %v4356_v23, %v4358_v37 }
 0x2a6   : > { %958 = vmax.xlane.f32.xlu0 %v957_v40  ;;  %v4362_v34 = vpop.f32.mrb[54].mxu1 }
 0x2a7   : > { %5636 = vst [vmem:[#allocation13_spill] sm:$0xff] %v4362_v34  ;;  %v4364_v46 = vpop.f32.mrb[55].mxu1 }
 0x2a8   : > { %5637 = vst [vmem:[#allocation14_spill] sm:$0xff] %v4364_v46  ;;  %v960_v51 = vmax.f32 %v4362_v34, %v4364_v46 }
 0x2aa   : > { %961 = vmax.xlane.f32.xlu1 %v960_v51  ;;  %v4368_v43 = vpop.f32.mrb[56].mxu1 }
 0x2ab   : > { %5638 = vst [vmem:[#allocation15_spill] sm:$0xff] %v4368_v43  ;;  %v4370_v5 = vpop.f32.mrb[57].mxu1 }
 0x2ac   : > { %5639 = vst [vmem:[#allocation16_spill] sm:$0xff] %v4370_v5  ;;  %v963_v14 = vmax.f32 %v4368_v43, %v4370_v5 }
 0x2ae   : > { %964 = vmax.xlane.f32.xlu0 %v963_v14  ;;  %v4374_v60 = vpop.f32.mrb[58].mxu1 }
 0x2af   : > { %5640 = vst [vmem:[#allocation17_spill] sm:$0xff] %v4374_v60  ;;  %v4376_v37 = vpop.f32.mrb[59].mxu1 }
 0x2b0   : > { %5641 = vst [vmem:[#allocation18_spill] sm:$0xff] %v4376_v37  ;;  %v966_v40 = vmax.f32 %v4374_v60, %v4376_v37  ;;  %v1502_v37 = vld [vmem:[%s5557_s2 + $0x8] sm:$0xff] }
 0x2b2   : > { %967 = vmax.xlane.f32.xlu1 %v966_v40  ;;  %v4380_v23 = vpop.f32.mrb[60].mxu1  ;;  %v1501_v40 = vld [vmem:[%s5557_s2] sm:$0xff] }
 0x2b3   : > { %5642 = vst [vmem:[#allocation19_spill] sm:$0xff] %v4380_v23  ;;  %v4382_v46 = vpop.f32.mrb[61].mxu1  ;;  %v3172_v60 = vpack.c.bf16 %v1502_v37, %v1501_v40  ;;  %v1506_v40 = vld [vmem:[%s5557_s2 + $0x28] sm:$0xff] }
 0x2b4   : > { %5643 = vst [vmem:[#allocation20_spill] sm:$0xff] %v4382_v46  ;;  %v969_v51 = vmax.f32 %v4380_v23, %v4382_v46 }
 0x2b5   : > { %3173 = vmatprep.subr.bf16.mxu0 %v3172_v60 }
 0x2b6   : > { %970 = vmax.xlane.f32.xlu0 %v969_v51  ;;  %v4386_v34 = vpop.f32.mrb[62].mxu1  ;;  %3175 = vmatpush3.bf16.msra.mxu0 %v3172_v60  ;;  %v1503_v51 = vld [vmem:[%s5557_s2 + $0x10] sm:$0xff]  ;;  %v1505_v60 = vld [vmem:[%s5557_s2 + $0x20] sm:$0xff] }
 0x2b7   : > { %5644 = vst [vmem:[#allocation21_spill] sm:$0xff] %v4386_v34  ;;  %v4388_v5 = vpop.f32.mrb[63].mxu1  ;;  %v3180_v17 = vpack.c.bf16 %v1506_v40, %v1505_v60  ;;  %v1509_v40 = vld [vmem:[%s5557_s2 + $0x40] sm:$0xff] }
 0x2b8   : > { %5645 = vst [vmem:[#allocation22_spill] sm:$0xff] %v4388_v5  ;;  %v972_v14 = vmax.f32 %v4386_v34, %v4388_v5  ;;  %v1504_v5 = vld [vmem:[%s5557_s2 + $0x18] sm:$0xff] }
 0x2ba   : > { %973 = vmax.xlane.f32.xlu1 %v972_v14  ;;  %v3176_v14 = vpack.c.bf16 %v1504_v5, %v1503_v51 }
 0x2bc   : > { %3177 = vmatprep.subr.bf16.mxu0 %v3176_v14 }
 0x2bd   : > { %3179 = vmatpush3.bf16.msra.mxu0 %v3176_v14 }
 0x2be   : > { %3181 = vmatprep.subr.bf16.mxu0 %v3180_v17 }
 0x2c1   : > { %3183 = vmatpush3.bf16.msra.mxu0 %v3180_v17 }
 0x2cb   : > { %v881_v34 = vpop.xlane.xlu0 %880 }
 0x2cc   : > { %v975_v46 = vsub.f32 %v4200_v49, %v881_v34  ;;  %v976_v23 = vsub.f32 %v4202_v50, %v881_v34 }
 0x2ce   : > { %v1039_v43 = vmul.f32 1.442695, %v975_v46  ;;  %v1041_v37 = vmul.f32 1.442695, %v976_v23 }
 0x2cf   : > { %v884_v20 = vpop.xlane.xlu0 %883 }
 0x2d0   : > { %3517 = vpow2.f32 %v1039_v43  ;;  %v977_v5 = vsub.f32 %v4206_v52, %v884_v20  ;;  %v978_v49 = vsub.f32 %v4208_v53, %v884_v20  ;;  %v1507_v52 = vld [vmem:[%s5557_s2 + $0x30] sm:$0xff]  ;;  %v1508_v53 = vld [vmem:[%s5557_s2 + $0x38] sm:$0xff] }
 0x2d1   : > { %3519 = vpow2.f32 %v1041_v37  ;;  %v3184_v43 = vpack.c.bf16 %v1508_v53, %v1507_v52 }
 0x2d2   : > { %v1043_v50 = vmul.f32 1.442695, %v977_v5  ;;  %v1045_v34 = vmul.f32 1.442695, %v978_v49  ;;  %v1510_v5 = vld [vmem:[%s5557_s2 + $0x48] sm:$0xff] }
 0x2d3   : > { %v887_v46 = vpop.xlane.xlu1 %886  ;;  %3185 = vmatprep.subr.bf16.mxu0 %v3184_v43 }
 0x2d4   : > { %3521 = vpow2.f32 %v1043_v50  ;;  %v979_v23 = vsub.f32 %v4212_v55, %v887_v46  ;;  %v980_v51 = vsub.f32 %v4214_v56, %v887_v46  ;;  %3187 = vmatpush3.bf16.msra.mxu0 %v3184_v43  ;;  %v3188_v50 = vpack.c.bf16 %v1510_v5, %v1509_v40 }
 0x2d5   : > { %3523 = vpow2.f32 %v1045_v34 }
 0x2d6   : > { %v1047_v14 = vmul.f32 1.442695, %v979_v23  ;;  %v1049_v11 = vmul.f32 1.442695, %v980_v51  ;;  %3189 = vmatprep.subr.bf16.mxu0 %v3188_v50 }
 0x2d7   : > { %v890_v20 = vpop.xlane.xlu1 %889 }
 0x2d8   : > { %3525 = vpow2.f32 %v1047_v14  ;;  %v981_v17 = vsub.f32 %v4218_v58, %v890_v20  ;;  %v982_v55 = vsub.f32 %v4220_v59, %v890_v20  ;;  %v1511_v59 = vld [vmem:[%s5557_s2 + $0x50] sm:$0xff]  ;;  %3191 = vmatpush3.bf16.msra.mxu0 %v3188_v50 }
 0x2d9   : > { %3527 = vpow2.f32 %v1049_v11  ;;  %v1512_v11 = vld [vmem:[%s5557_s2 + $0x58] sm:$0xff] }
 0x2da   : > { %v4424_v56 = vpop.eup %3517  ;;  %v1051_v37 = vmul.f32 1.442695, %v981_v17  ;;  %v1053_v60 = vmul.f32 1.442695, %v982_v55  ;;  %v3192_v51 = vpack.c.bf16 %v1512_v11, %v1511_v59 }
 0x2db   : > { %v4432_v49 = vpop.eup %3519  ;;  %v893_v58 = vpop.xlane.xlu0 %892 }
 0x2dc   : > { %3529 = vpow2.f32 %v1051_v37  ;;  %v983_v34 = vsub.f32 %v4224_v61, %v893_v58  ;;  %v984_v46 = vsub.f32 %v4226_v62, %v893_v58  ;;  %v1167_v23 = vadd.f32 %v4432_v49, %v4424_v56  ;;  %3193 = vmatprep.subr.bf16.mxu0 %v3192_v51 }
 0x2dd   : > { %3531 = vpow2.f32 %v1053_v60  ;;  %3195 = vmatpush3.bf16.msra.mxu0 %v3192_v51 }
 0x2de   : > { %v4444_v14 = vpop.eup %3521  ;;  %v1055_v52 = vmul.f32 1.442695, %v983_v34  ;;  %v1057_v53 = vmul.f32 1.442695, %v984_v46  ;;  %1168 = vadd.xlane.f32.xlu0 %v1167_v23 }
 0x2df   : > { %v4446_v20 = vpop.eup %3523  ;;  %v896_v43 = vpop.xlane.xlu1 %895 }
 0x2e0   : > { %3533 = vpow2.f32 %v1055_v52  ;;  %v985_v61 = vsub.f32 %v4230_v0, %v896_v43  ;;  %v986_v62 = vsub.f32 %v4232_v1, %v896_v43  ;;  %v1170_v17 = vadd.f32 %v4446_v20, %v4444_v14 }
 0x2e1   : > { %3535 = vpow2.f32 %v1057_v53 }
 0x2e2   : > { %v4452_v55 = vpop.eup %3525  ;;  %v1059_v37 = vmul.f32 1.442695, %v985_v61  ;;  %v1061_v60 = vmul.f32 1.442695, %v986_v62  ;;  %1171 = vadd.xlane.f32.xlu1 %v1170_v17 }
 0x2e3   : > { %v4454_v40 = vpop.eup %3527  ;;  %v899_v5 = vpop.xlane.xlu0 %898 }
 0x2e4   : > { %3537 = vpow2.f32 %v1059_v37  ;;  %v987_v58 = vsub.f32 %v4236_v3, %v899_v5  ;;  %v988_v0 = vsub.f32 %v4238_v4, %v899_v5  ;;  %v1173_v1 = vadd.f32 %v4454_v40, %v4452_v55  ;;  %v1514_v37 = vld [vmem:[%s5557_s2 + $0x68] sm:$0xff] }
 0x2e5   : > { %3539 = vpow2.f32 %v1061_v60 }
 0x2e6   : > { %v4460_v50 = vpop.eup %3529  ;;  %v1063_v59 = vmul.f32 1.442695, %v987_v58  ;;  %v1065_v11 = vmul.f32 1.442695, %v988_v0  ;;  %1174 = vadd.xlane.f32.xlu0 %v1173_v1 }
 0x2e7   : > { %v4462_v34 = vpop.eup %3531  ;;  %v902_v46 = vpop.xlane.xlu1 %901 }
 0x2e8   : > { %3541 = vpow2.f32 %v1063_v59  ;;  %v989_v23 = vsub.f32 %v4242_v6, %v902_v46  ;;  %v990_v51 = vsub.f32 %v4244_v7, %v902_v46  ;;  %v1176_v3 = vadd.f32 %v4462_v34, %v4460_v50  ;;  %v1513_v7 = vld [vmem:[%s5557_s2 + $0x60] sm:$0xff] }
 0x2e9   : > { %3543 = vpow2.f32 %v1065_v11  ;;  %v3196_v60 = vpack.c.bf16 %v1514_v37, %v1513_v7 }
 0x2ea   : > { %v4468_v4 = vpop.eup %3533  ;;  %v1067_v52 = vmul.f32 1.442695, %v989_v23  ;;  %v1069_v53 = vmul.f32 1.442695, %v990_v51  ;;  %1177 = vadd.xlane.f32.xlu1 %v1176_v3 }
 0x2eb   : > { %v4470_v43 = vpop.eup %3535  ;;  %v905_v61 = vpop.xlane.xlu0 %904  ;;  %3197 = vmatprep.subr.bf16.mxu0 %v3196_v60 }
 0x2ec   : > { %3545 = vpow2.f32 %v1067_v52  ;;  %v991_v62 = vsub.f32 %v4248_v9, %v905_v61  ;;  %v992_v17 = vsub.f32 %v4250_v10, %v905_v61  ;;  %v1179_v6 = vadd.f32 %v4470_v43, %v4468_v4  ;;  %3199 = vmatpush3.bf16.msra.mxu0 %v3196_v60  ;;  %v1515_v61 = vld [vmem:[%s5557_s2 + $0x70] sm:$0xff] }
 0x2ed   : > { %3547 = vpow2.f32 %v1069_v53 }
 0x2ee   : > { %v4482_v5 = vpop.eup %3537  ;;  %v1071_v58 = vmul.f32 1.442695, %v991_v62  ;;  %v1073_v0 = vmul.f32 1.442695, %v992_v17  ;;  %1180 = vadd.xlane.f32.xlu0 %v1179_v6  ;;  %v1516_v62 = vld [vmem:[%s5557_s2 + $0x78] sm:$0xff] }
 0x2ef   : > { %v4484_v9 = vpop.eup %3539  ;;  %v908_v10 = vpop.xlane.xlu1 %907  ;;  %v3200_v17 = vpack.c.bf16 %v1516_v62, %v1515_v61 }
 0x2f0   : > { %3549 = vpow2.f32 %v1071_v58  ;;  %v993_v1 = vsub.f32 %v4254_v12, %v908_v10  ;;  %v994_v59 = vsub.f32 %v4256_v13, %v908_v10  ;;  %v1182_v11 = vadd.f32 %v4484_v9, %v4482_v5 }
 0x2f1   : > { %3551 = vpow2.f32 %v1073_v0  ;;  %3201 = vmatprep.subr.bf16.mxu0 %v3200_v17 }
 0x2f2   : > { %v4490_v46 = vpop.eup %3541  ;;  %v1075_v23 = vmul.f32 1.442695, %v993_v1  ;;  %v1077_v51 = vmul.f32 1.442695, %v994_v59  ;;  %1183 = vadd.xlane.f32.xlu1 %v1182_v11  ;;  %3203 = vmatpush3.bf16.msra.mxu0 %v3200_v17 }
 0x2f3   : > { %v4492_v3 = vpop.eup %3543  ;;  %v911_v52 = vpop.xlane.xlu0 %910 }
 0x2f4   : > { %3553 = vpow2.f32 %v1075_v23  ;;  %v995_v53 = vsub.f32 %v4260_v15, %v911_v52  ;;  %v996_v12 = vsub.f32 %v4262_v16, %v911_v52  ;;  %v1185_v13 = vadd.f32 %v4492_v3, %v4490_v46 }
 0x2f5   : > { %3555 = vpow2.f32 %v1077_v51  ;;  %2965 = vmatmul.mubr.f32.vlgmr.msra.gmra.mrb[32].mxu0 %v3883_v25 }
 0x2f6   : > { %v4504_v6 = vpop.eup %3545  ;;  %v1079_v7 = vmul.f32 1.442695, %v995_v53  ;;  %v1081_v37 = vmul.f32 1.442695, %v996_v12  ;;  %1186 = vadd.xlane.f32.xlu0 %v1185_v13  ;;  %2967 = vmatprep.mubr.f32.mxu0 %v3886_v26 }
 0x2f7   : > { %v4506_v15 = vpop.eup %3547  ;;  %v914_v16 = vpop.xlane.xlu1 %913 }
 0x2f8   : > { %3557 = vpow2.f32 %v1079_v7  ;;  %v997_v60 = vsub.f32 %v4266_v18, %v914_v16  ;;  %v998_v58 = vsub.f32 %v4268_v19, %v914_v16  ;;  %v1188_v0 = vadd.f32 %v4506_v15, %v4504_v6 }
 0x2f9   : > { %3559 = vpow2.f32 %v1081_v37  ;;  %2968 = vmatmul.mubr.f32.gmra.mrb[34].mxu0 %v3891_v27 }
 0x2fa   : > { %v4512_v10 = vpop.eup %3549  ;;  %v1083_v1 = vmul.f32 1.442695, %v997_v60  ;;  %v1085_v59 = vmul.f32 1.442695, %v998_v58  ;;  %1189 = vadd.xlane.f32.xlu1 %v1188_v0  ;;  %2970 = vmatprep.mubr.f32.mxu0 %v3894_v28 }
 0x2fb   : > { %v4514_v11 = vpop.eup %3551  ;;  %v917_v23 = vpop.xlane.xlu0 %916 }
 0x2fc   : > { %3561 = vpow2.f32 %v1083_v1  ;;  %v999_v18 = vsub.f32 %v4272_v21, %v917_v23  ;;  %v1000_v19 = vsub.f32 %v4274_v22, %v917_v23  ;;  %v1191_v51 = vadd.f32 %v4514_v11, %v4512_v10 }
 0x2fd   : > { %3563 = vpow2.f32 %v1085_v59  ;;  %2971 = vmatmul.mubr.f32.gmra.mrb[36].mxu0 %v3899_v29 }
 0x2fe   : > { %v4522_v52 = vpop.eup %3553  ;;  %v1087_v53 = vmul.f32 1.442695, %v999_v18  ;;  %v1089_v12 = vmul.f32 1.442695, %v1000_v19  ;;  %1192 = vadd.xlane.f32.xlu0 %v1191_v51  ;;  %2973 = vmatprep.mubr.f32.mxu0 %v3902_v30  ;;  %v3713_v18 = vld [vmem:[%s3846_s14 + $0x48] sm:$0xff]  ;;  %v3714_v19 = vld [vmem:[%s3846_s14 + $0x50] sm:$0xff] }
 0x2ff   : > { %v4524_v13 = vpop.eup %3555  ;;  %v920_v61 = vpop.xlane.xlu1 %919 }
 0x300   : > { %3565 = vpow2.f32 %v1087_v53  ;;  %v1001_v25 = vsub.f32 %v4278_v24, %v920_v61  ;;  %v1002_v21 = vsub.f32 %v4280_v33, %v920_v61  ;;  %v1194_v22 = vadd.f32 %v4524_v13, %v4522_v52 }
 0x301   : > { %3567 = vpow2.f32 %v1089_v12  ;;  %2974 = vmatmul.mubr.f32.gmra.mrb[38].mxu0 %v3907_v31 }
 0x302   : > { %v4532_v26 = vpop.eup %3557  ;;  %v1091_v62 = vmul.f32 1.442695, %v1001_v25  ;;  %v1093_v17 = vmul.f32 1.442695, %v1002_v21  ;;  %1195 = vadd.xlane.f32.xlu1 %v1194_v22  ;;  %2976 = vmatprep.mubr.f32.mxu0 %v3910_v32  ;;  %v3715_v21 = vld [vmem:[%s3846_s14 + $0x58] sm:$0xff] }
 0x303   : > { %v4534_v7 = vpop.eup %3559  ;;  %v923_v37 = vpop.xlane.xlu0 %922 }
 0x304   : > { %3569 = vpow2.f32 %v1091_v62  ;;  %v1003_v27 = vsub.f32 %v4284_v35, %v923_v37  ;;  %v1004_v24 = vsub.f32 %v4286_v36, %v923_v37  ;;  %v1197_v33 = vadd.f32 %v4534_v7, %v4532_v26  ;;  %v3716_v62 = vld [vmem:[%s3846_s14 + $0x60] sm:$0xff] }
 0x305   : > { %3571 = vpow2.f32 %v1093_v17  ;;  %2977 = vmatmul.mubr.f32.gmra.mrb[40].mxu0 %v3713_v18 }
 0x306   : > { %v4542_v28 = vpop.eup %3561  ;;  %v1095_v16 = vmul.f32 1.442695, %v1003_v27  ;;  %v1097_v60 = vmul.f32 1.442695, %v1004_v24  ;;  %1198 = vadd.xlane.f32.xlu0 %v1197_v33  ;;  %2979 = vmatprep.mubr.f32.mxu0 %v3714_v19 }
 0x307   : > { %v4544_v58 = vpop.eup %3563  ;;  %v926_v29 = vpop.xlane.xlu1 %925 }
 0x308   : > { %3573 = vpow2.f32 %v1095_v16  ;;  %v1005_v35 = vsub.f32 %v4290_v38, %v926_v29  ;;  %v1006_v36 = vsub.f32 %v4292_v39, %v926_v29  ;;  %v1200_v30 = vadd.f32 %v4544_v58, %v4542_v28  ;;  %v3717_v16 = vld [vmem:[%s3846_s14 + $0x68] sm:$0xff]  ;;  %v3718_v29 = vld [vmem:[%s3846_s14 + $0x70] sm:$0xff] }
 0x309   : > { %3575 = vpow2.f32 %v1097_v60  ;;  %2980 = vmatmul.mubr.f32.gmra.mrb[42].mxu0 %v3715_v21 }
 0x30a   : > { %v4552_v0 = vpop.eup %3565  ;;  %v1099_v1 = vmul.f32 1.442695, %v1005_v35  ;;  %v1101_v59 = vmul.f32 1.442695, %v1006_v36  ;;  %1201 = vadd.xlane.f32.xlu1 %v1200_v30  ;;  %2982 = vmatprep.mubr.f32.mxu0 %v3716_v62 }
 0x30b   : > { %v4554_v23 = vpop.eup %3567  ;;  %v929_v31 = vpop.xlane.xlu0 %928 }
 0x30c   : > { %3577 = vpow2.f32 %v1099_v1  ;;  %v1007_v38 = vsub.f32 %v4296_v41, %v929_v31  ;;  %v1008_v39 = vsub.f32 %v4298_v42, %v929_v31  ;;  %v1203_v32 = vadd.f32 %v4554_v23, %v4552_v0  ;;  %v3719_v31 = vld [vmem:[%s3846_s14 + $0x78] sm:$0xff] }
 0x30d   : > { %3579 = vpow2.f32 %v1101_v59  ;;  %2983 = vmatmul.mubr.f32.gmra.mrb[44].mxu0 %v3717_v16 }
 0x30e   : > { %v4562_v51 = vpop.eup %3569  ;;  %v1103_v53 = vmul.f32 1.442695, %v1007_v38  ;;  %v1105_v12 = vmul.f32 1.442695, %v1008_v39  ;;  %1204 = vadd.xlane.f32.xlu0 %v1203_v32  ;;  %2985 = vmatprep.mubr.f32.mxu0 %v3718_v29  ;;  %v3720_v38 = vld [vmem:[%s3846_s14 + $0x80] sm:$0xff] }
 0x30f   : > { %v4564_v61 = vpop.eup %3571  ;;  %v932_v25 = vpop.xlane.xlu1 %931 }
 0x310   : > { %3581 = vpow2.f32 %v1103_v53  ;;  %v1009_v41 = vsub.f32 %v4302_v44, %v932_v25  ;;  %v1010_v42 = vsub.f32 %v4304_v45, %v932_v25  ;;  %v1206_v22 = vadd.f32 %v4564_v61, %v4562_v51  ;;  %v3721_v25 = vld [vmem:[%s3846_s14 + $0x88] sm:$0xff] }
 0x311   : > { %3583 = vpow2.f32 %v1105_v12  ;;  %2986 = vmatmul.mubr.f32.gmra.mrb[46].mxu0 %v3719_v31  ;;  %v3725_v31 = vld [vmem:[%s3846_s14 + $0xa8] sm:$0xff] }
 0x312   : > { %v4572_v17 = vpop.eup %3573  ;;  %v1107_v37 = vmul.f32 1.442695, %v1009_v41  ;;  %v1109_v27 = vmul.f32 1.442695, %v1010_v42  ;;  %1207 = vadd.xlane.f32.xlu1 %v1206_v22  ;;  %2988 = vmatprep.mubr.f32.mxu0 %v3720_v38  ;;  %v3722_v41 = vld [vmem:[%s3846_s14 + $0x90] sm:$0xff] }
 0x313   : > { %v4574_v24 = vpop.eup %3575  ;;  %v935_v33 = vpop.xlane.xlu0 %934 }
 0x314   : > { %3585 = vpow2.f32 %v1107_v37  ;;  %v1011_v44 = vsub.f32 %v4308_v47, %v935_v33  ;;  %v1012_v45 = vsub.f32 %v4310_v48, %v935_v33  ;;  %v1209_v60 = vadd.f32 %v4574_v24, %v4572_v17  ;;  %v3723_v33 = vld [vmem:[%s3846_s14 + $0x98] sm:$0xff] }
 0x315   : > { %3587 = vpow2.f32 %v1109_v27  ;;  %2989 = vmatmul.mubr.f32.gmra.mrb[48].mxu0 %v3721_v25 }
 0x316   : > { %v4582_v35 = vpop.eup %3577  ;;  %v1111_v36 = vmul.f32 1.442695, %v1011_v44  ;;  %v1113_v30 = vmul.f32 1.442695, %v1012_v45  ;;  %1210 = vadd.xlane.f32.xlu0 %v1209_v60  ;;  %2991 = vmatprep.mubr.f32.mxu0 %v3722_v41  ;;  %v3724_v45 = vld [vmem:[%s3846_s14 + $0xa0] sm:$0xff]  ;;  %v5649_v41 = vld [vmem:[#allocation5_spill] sm:$0xff] }
 0x317   : > { %v4584_v1 = vpop.eup %3579  ;;  %v938_v59 = vpop.xlane.xlu1 %937 }
 0x318   : > { %3589 = vpow2.f32 %v1111_v36  ;;  %v1013_v47 = vsub.f32 %v4314_v54, %v938_v59  ;;  %v1014_v48 = vsub.f32 %v4316_v57, %v938_v59  ;;  %v1212_v18 = vadd.f32 %v4584_v1, %v4582_v35 }
 0x319   : > { %3591 = vpow2.f32 %v1113_v30  ;;  %2992 = vmatmul.mubr.f32.gmra.mrb[50].mxu0 %v3723_v33 }
 0x31a   : > { %v4592_v39 = vpop.eup %3581  ;;  %v1115_v32 = vmul.f32 1.442695, %v1013_v47  ;;  %v1117_v19 = vmul.f32 1.442695, %v1014_v48  ;;  %1213 = vadd.xlane.f32.xlu1 %v1212_v18  ;;  %2994 = vmatprep.mubr.f32.mxu0 %v3724_v45  ;;  %v5648_v48 = vld [vmem:[#allocation4_spill] sm:$0xff] }
 0x31b   : > { %v4594_v53 = vpop.eup %3583  ;;  %v941_v12 = vpop.xlane.xlu0 %940 }
 0x31c   : > { %3593 = vpow2.f32 %v1115_v32  ;;  %v1015_v54 = vsub.f32 %v4320_v63, %v941_v12  ;;  %v1016_v57 = vsub.f32 %v4322_v2, %v941_v12  ;;  %v1215_v21 = vadd.f32 %v4594_v53, %v4592_v39  ;;  %v5646_v2 = vld [vmem:[#allocation2_spill] sm:$0xff]  ;;  %v3726_v32 = vld [vmem:[%s3846_s14 + $0xb0] sm:$0xff] }
 0x31d   : > { %3595 = vpow2.f32 %v1117_v19  ;;  %2995 = vmatmul.mubr.f32.gmra.mrb[52].mxu0 %v3725_v31 }
 0x31e   : > { %v4602_v42 = vpop.eup %3585  ;;  %v1119_v22 = vmul.f32 1.442695, %v1015_v54  ;;  %v1121_v62 = vmul.f32 1.442695, %v1016_v57  ;;  %1216 = vadd.xlane.f32.xlu0 %v1215_v21  ;;  %2997 = vmatprep.mubr.f32.mxu0 %v3726_v32  ;;  %v3727_v21 = vld [vmem:[%s3846_s14 + $0xb8] sm:$0xff] }
 0x31f   : > { %v4604_v37 = vpop.eup %3587  ;;  %v944_v27 = vpop.xlane.xlu1 %943 }
 0x320   : > { %3597 = vpow2.f32 %v1119_v22  ;;  %v1017_v63 = vsub.f32 %v4326_v8, %v944_v27  ;;  %v1018_v16 = vsub.f32 %v5646_v2, %v944_v27  ;;  %v1218_v44 = vadd.f32 %v4604_v37, %v4602_v42  ;;  %v5647_v8 = vld [vmem:[#allocation3_spill] sm:$0xff] }
 0x321   : > { %3599 = vpow2.f32 %v1121_v62  ;;  %2998 = vmatmul.mubr.f32.gmra.mrb[54].mxu0 %v3727_v21  ;;  %v5650_v62 = vld [vmem:[#allocation6_spill] sm:$0xff]  ;;  %v3731_v21 = vld [vmem:[%s3846_s14 + $0xd8] sm:$0xff] }
 0x322   : > { %v4612_v60 = vpop.eup %3589  ;;  %v1123_v29 = vmul.f32 1.442695, %v1017_v63  ;;  %v1125_v36 = vmul.f32 1.442695, %v1018_v16  ;;  %1219 = vadd.xlane.f32.xlu1 %v1218_v44  ;;  %v3728_v63 = vld [vmem:[%s3846_s14 + $0xc0] sm:$0xff] }
 0x323   : > { %v4614_v30 = vpop.eup %3591  ;;  %v947_v59 = vpop.xlane.xlu0 %946  ;;  %3000 = vmatprep.mubr.f32.mxu0 %v3728_v63  ;;  %v3732_v63 = vld [vmem:[%s3846_s14 + $0xe0] sm:$0xff] }
 0x324   : > { %3601 = vpow2.f32 %v1123_v29  ;;  %v1019_v47 = vsub.f32 %v5647_v8, %v947_v59  ;;  %v1020_v18 = vsub.f32 %v5648_v48, %v947_v59  ;;  %v1221_v38 = vadd.f32 %v4614_v30, %v4612_v60  ;;  %v5651_v59 = vld [vmem:[#allocation7_spill] sm:$0xff]  ;;  %v5652_v8 = vld [vmem:[#allocation8_spill] sm:$0xff] }
 0x325   : > { %3603 = vpow2.f32 %v1125_v36  ;;  %v3729_v36 = vld [vmem:[%s3846_s14 + $0xc8] sm:$0xff] }
 0x326   : > { %v4622_v19 = vpop.eup %3593  ;;  %v1127_v12 = vmul.f32 1.442695, %v1019_v47  ;;  %v1129_v25 = vmul.f32 1.442695, %v1020_v18  ;;  %1222 = vadd.xlane.f32.xlu0 %v1221_v38  ;;  %3001 = vmatmul.mubr.f32.gmra.mrb[56].mxu0 %v3729_v36  ;;  %v3730_v18 = vld [vmem:[%s3846_s14 + $0xd0] sm:$0xff] }
 0x327   : > { %v4624_v54 = vpop.eup %3595  ;;  %v950_v57 = vpop.xlane.xlu1 %949  ;;  %3003 = vmatprep.mubr.f32.mxu0 %v3730_v18 }
 0x328   : > { %3605 = vpow2.f32 %v1127_v12  ;;  %v1021_v22 = vsub.f32 %v5649_v41, %v950_v57  ;;  %v1022_v27 = vsub.f32 %v5650_v62, %v950_v57  ;;  %v1224_v33 = vadd.f32 %v4624_v54, %v4622_v19  ;;  %v5653_v41 = vld [vmem:[#allocation9_spill] sm:$0xff]  ;;  %v5654_v62 = vld [vmem:[#allocation10_spill] sm:$0xff] }
 0x329   : > { %3607 = vpow2.f32 %v1129_v25 }
 0x32a   : > { %v4632_v2 = vpop.eup %3597  ;;  %v1131_v16 = vmul.f32 1.442695, %v1021_v22  ;;  %v1133_v44 = vmul.f32 1.442695, %v1022_v27  ;;  %1225 = vadd.xlane.f32.xlu1 %v1224_v33  ;;  %3004 = vmatmul.mubr.f32.gmra.mrb[58].mxu0 %v3731_v21 }
 0x32b   : > { %v4634_v45 = vpop.eup %3599  ;;  %v953_v29 = vpop.xlane.xlu0 %952  ;;  %3006 = vmatprep.mubr.f32.mxu0 %v3732_v63 }
 0x32c   : > { %3609 = vpow2.f32 %v1131_v16  ;;  %v1023_v31 = vsub.f32 %v5651_v59, %v953_v29  ;;  %v1024_v47 = vsub.f32 %v5652_v8, %v953_v29  ;;  %v1227_v48 = vadd.f32 %v4634_v45, %v4632_v2  ;;  %v5655_v8 = vld [vmem:[#allocation11_spill] sm:$0xff] }
 0x32d   : > { %3611 = vpow2.f32 %v1133_v44 }
 0x32e   : > { %v4642_v38 = vpop.eup %3601  ;;  %v1135_v32 = vmul.f32 1.442695, %v1023_v31  ;;  %v1137_v12 = vmul.f32 1.442695, %v1024_v47  ;;  %1228 = vadd.xlane.f32.xlu0 %v1227_v48  ;;  %v3733_v31 = vld [vmem:[%s3846_s14 + $0xe8] sm:$0xff]  ;;  %v5656_v48 = vld [vmem:[#allocation12_spill] sm:$0xff] }
 0x32f   : > { %v4644_v25 = vpop.eup %3603  ;;  %v956_v57 = vpop.xlane.xlu1 %955  ;;  %3007 = vmatmul.mubr.f32.gmra.mrb[60].mxu0 %v3733_v31 }
 0x330   : > { %3613 = vpow2.f32 %v1135_v32  ;;  %v1025_v22 = vsub.f32 %v5653_v41, %v956_v57  ;;  %v1026_v27 = vsub.f32 %v5654_v62, %v956_v57  ;;  %v1230_v33 = vadd.f32 %v4644_v25, %v4642_v38 }
 0x331   : > { %3615 = vpow2.f32 %v1137_v12  ;;  %v3734_v12 = vld [vmem:[%s3846_s14 + $0xf0] sm:$0xff] }
 0x332   : > { %v4652_v16 = vpop.eup %3605  ;;  %v1139_v44 = vmul.f32 1.442695, %v1025_v22  ;;  %v1141_v29 = vmul.f32 1.442695, %v1026_v27  ;;  %1231 = vadd.xlane.f32.xlu1 %v1230_v33  ;;  %3009 = vmatprep.mubr.f32.mxu0 %v3734_v12  ;;  %v3735_v27 = vld [vmem:[%s3846_s14 + $0xf8] sm:$0xff] }
 0x333   : > { %v4654_v36 = vpop.eup %3607  ;;  %v959_v59 = vpop.xlane.xlu0 %958  ;;  %3010 = vmatmul.mubr.f32.gmra.mrb[62].mxu0 %v3735_v27  ;;  %v5659_v33 = vld [vmem:[#allocation13_spill] sm:$0xff] }
 0x334   : > { %3617 = vpow2.f32 %v1139_v44  ;;  %v1027_v47 = vsub.f32 %v5655_v8, %v959_v59  ;;  %v1028_v18 = vsub.f32 %v5656_v48, %v959_v59  ;;  %v1233_v32 = vadd.f32 %v4654_v36, %v4652_v16  ;;  %v5660_v44 = vld [vmem:[#allocation14_spill] sm:$0xff] }
 0x335   : > { %3619 = vpow2.f32 %v1141_v29 }
 0x336   : > { %v4662_v57 = vpop.eup %3609  ;;  %v1143_v21 = vmul.f32 1.442695, %v1027_v47  ;;  %v1145_v41 = vmul.f32 1.442695, %v1028_v18  ;;  %1234 = vadd.xlane.f32.xlu0 %v1233_v32  ;;  %v5663_v32 = vld [vmem:[#allocation15_spill] sm:$0xff] }
 0x337   : > { %5657 = vst [vmem:[#allocation2_spill] sm:$0xff] %v4662_v57  ;;  %v4664_v22 = vpop.eup %3611  ;;  %v962_v62 = vpop.xlane.xlu1 %961 }
 0x338   : > { %5658 = vst [vmem:[#allocation3_spill] sm:$0xff] %v4664_v22  ;;  %3621 = vpow2.f32 %v1143_v21  ;;  %v1029_v63 = vsub.f32 %v5659_v33, %v962_v62  ;;  %v1030_v59 = vsub.f32 %v5660_v44, %v962_v62  ;;  %v1236_v31 = vadd.f32 %v4664_v22, %v4662_v57  ;;  %v5664_v21 = vld [vmem:[#allocation16_spill] sm:$0xff] }
 0x339   : > { %3623 = vpow2.f32 %v1145_v41 }
 0x33a   : > { %v4671_v29 = vpop.eup %3613  ;;  %v1147_v8 = vmul.f32 1.442695, %v1029_v63  ;;  %v1149_v47 = vmul.f32 1.442695, %v1030_v59  ;;  %1237 = vadd.xlane.f32.xlu1 %v1236_v31  ;;  %v5667_v31 = vld [vmem:[#allocation17_spill] sm:$0xff] }
 0x33b   : > { %5661 = vst [vmem:[#allocation4_spill] sm:$0xff] %v4671_v29  ;;  %v4673_v48 = vpop.eup %3615  ;;  %v965_v18 = vpop.xlane.xlu0 %964 }
 0x33c   : > { %5662 = vst [vmem:[#allocation5_spill] sm:$0xff] %v4673_v48  ;;  %3625 = vpow2.f32 %v1147_v8  ;;  %v1031_v12 = vsub.f32 %v5663_v32, %v965_v18  ;;  %v1032_v27 = vsub.f32 %v5664_v21, %v965_v18  ;;  %v1239_v62 = vadd.f32 %v4673_v48, %v4671_v29  ;;  %v5668_v8 = vld [vmem:[#allocation18_spill] sm:$0xff] }
 0x33d   : > { %3627 = vpow2.f32 %v1149_v47 }
 0x33e   : > { %v4679_v33 = vpop.eup %3617  ;;  %v1151_v41 = vmul.f32 1.442695, %v1031_v12  ;;  %v1153_v44 = vmul.f32 1.442695, %v1032_v27  ;;  %1240 = vadd.xlane.f32.xlu0 %v1239_v62  ;;  %v5669_v62 = vld [vmem:[#allocation19_spill] sm:$0xff] }
 0x33f   : > { %5665 = vst [vmem:[#allocation6_spill] sm:$0xff] %v4679_v33  ;;  %v4681_v63 = vpop.eup %3619  ;;  %v968_v59 = vpop.xlane.xlu1 %967 }
 0x340   : > { %5666 = vst [vmem:[#allocation7_spill] sm:$0xff] %v4681_v63  ;;  %3629 = vpow2.f32 %v1151_v41  ;;  %v1033_v57 = vsub.f32 %v5667_v31, %v968_v59  ;;  %v1034_v22 = vsub.f32 %v5668_v8, %v968_v59  ;;  %v1242_v18 = vadd.f32 %v4681_v63, %v4679_v33  ;;  %v5670_v41 = vld [vmem:[#allocation20_spill] sm:$0xff] }
 0x341   : > { %3631 = vpow2.f32 %v1153_v44 }
 0x342   : > { %v4687_v32 = vpop.eup %3621  ;;  %v1155_v47 = vmul.f32 1.442695, %v1033_v57  ;;  %v1157_v21 = vmul.f32 1.442695, %v1034_v22  ;;  %1243 = vadd.xlane.f32.xlu1 %v1242_v18  ;;  %v5671_v18 = vld [vmem:[#allocation21_spill] sm:$0xff] }
 0x343   : > { %v4689_v12 = vpop.eup %3623  ;;  %v971_v27 = vpop.xlane.xlu0 %970 }
 0x344   : > { %3633 = vpow2.f32 %v1155_v47  ;;  %v1035_v29 = vsub.f32 %v5669_v62, %v971_v27  ;;  %v1036_v48 = vsub.f32 %v5670_v41, %v971_v27  ;;  %v1245_v59 = vadd.f32 %v4689_v12, %v4687_v32  ;;  %v5672_v47 = vld [vmem:[#allocation22_spill] sm:$0xff] }
 0x345   : > { %3635 = vpow2.f32 %v1157_v21 }
 0x346   : > { %v4695_v31 = vpop.eup %3625  ;;  %v1159_v44 = vmul.f32 1.442695, %v1035_v29  ;;  %v1161_v8 = vmul.f32 1.442695, %v1036_v48  ;;  %1246 = vadd.xlane.f32.xlu0 %v1245_v59 }
 0x347   : > { %v4697_v57 = vpop.eup %3627  ;;  %v974_v22 = vpop.xlane.xlu1 %973 }
 0x348   : > { %3637 = vpow2.f32 %v1159_v44  ;;  %v1037_v33 = vsub.f32 %v5671_v18, %v974_v22  ;;  %v1038_v63 = vsub.f32 %v5672_v47, %v974_v22  ;;  %v1248_v27 = vadd.f32 %v4697_v57, %v4695_v31 }
 0x349   : > { %3639 = vpow2.f32 %v1161_v8 }
 0x34a   : > { %v4703_v62 = vpop.eup %3629  ;;  %v1163_v21 = vmul.f32 1.442695, %v1037_v33  ;;  %v1165_v41 = vmul.f32 1.442695, %v1038_v63  ;;  %1249 = vadd.xlane.f32.xlu1 %v1248_v27 }
 0x34b   : > { %5673 = vst [vmem:[#allocation8_spill] sm:$0xff] %v4703_v62  ;;  %v4705_v29 = vpop.eup %3631 }
 0x34c   : > { %5674 = vst [vmem:[#allocation9_spill] sm:$0xff] %v4705_v29  ;;  %3641 = vpow2.f32 %v1163_v21  ;;  %v1251_v48 = vadd.f32 %v4705_v29, %v4703_v62 }
 0x34d   : > { %3643 = vpow2.f32 %v1165_v41 }
 0x34e   : > { %v4709_v59 = vpop.eup %3633  ;;  %1252 = vadd.xlane.f32.xlu0 %v1251_v48 }
 0x34f   : > { %5675 = vst [vmem:[#allocation10_spill] sm:$0xff] %v4709_v59  ;;  %v4711_v44 = vpop.eup %3635 }
 0x350   : > { %5676 = vst [vmem:[#allocation11_spill] sm:$0xff] %v4711_v44  ;;  %v1254_v8 = vadd.f32 %v4711_v44, %v4709_v59 }
 0x352   : > { %v4715_v22 = vpop.eup %3637  ;;  %1255 = vadd.xlane.f32.xlu1 %v1254_v8 }
 0x353   : > { %5677 = vst [vmem:[#allocation12_spill] sm:$0xff] %v4715_v22  ;;  %v4717_v33 = vpop.eup %3639 }
 0x354   : > { %5678 = vst [vmem:[#allocation13_spill] sm:$0xff] %v4717_v33  ;;  %v1257_v63 = vadd.f32 %v4717_v33, %v4715_v22 }
 0x356   : > { %v4721_v18 = vpop.eup %3641  ;;  %1258 = vadd.xlane.f32.xlu0 %v1257_v63 }
 0x357   : > { %5679 = vst [vmem:[#allocation14_spill] sm:$0xff] %v4721_v18  ;;  %v4723_v47 = vpop.eup %3643 }
 0x358   : > { %5680 = vst [vmem:[#allocation15_spill] sm:$0xff] %v4723_v47  ;;  %v1260_v27 = vadd.f32 %v4723_v47, %v4721_v18 }
 0x35a   : > { %1261 = vadd.xlane.f32.xlu1 %v1260_v27 }
 0x36b   : > { %v1169_v21 = vpop.xlane.xlu0 %1168 }
 0x36f   : > { %v1172_v41 = vpop.xlane.xlu1 %1171 }
 0x370   : > { %3645 = vrcp.f32 %v1172_v41 }
 0x371   : > { %3647 = vrcp.f32 %v1169_v21 }
 0x373   : > { %v1175_v48 = vpop.xlane.xlu0 %1174 }
 0x374   : > { %3649 = vrcp.f32 %v1175_v48 }
 0x377   : > { %v1178_v8 = vpop.xlane.xlu1 %1177 }
 0x378   : > { %3651 = vrcp.f32 %v1178_v8 }
 0x37a   : > { %v3646_v22 = vpop.eup %3645 }
 0x37b   : > { %v1181_v59 = vpop.xlane.xlu0 %1180  ;;  %v3648_v62 = vpop.eup %3647  ;;  %v4728_v18 = vmul.f32 %v3646_v22, %v4446_v20  ;;  %v4731_v41 = vmul.f32 %v3646_v22, %v4444_v14 }
 0x37c   : > { %3653 = vrcp.f32 %v1181_v59  ;;  %v4734_v59 = vmul.f32 %v3648_v62, %v4432_v49  ;;  %v4740_v8 = vmul.f32 %v3648_v62, %v4424_v56 }
 0x37d   : > { %5681 = vst [vmem:[#allocation16_spill] sm:$0xff] %v4731_v41 }
 0x37e   : > { %v3650_v47 = vpop.eup %3649  ;;  %v1396_v22 = vadd.f32 %v4728_v18, %v4734_v59 }
 0x37f   : > { %v1184_v44 = vpop.xlane.xlu1 %1183  ;;  %v4743_v20 = vmul.f32 %v3650_v47, %v4452_v55 }
 0x380   : > { %3655 = vrcp.f32 %v1184_v44  ;;  %v4737_v44 = vmul.f32 %v3650_v47, %v4454_v40  ;;  %v1359_v40 = vadd.f32 %v4731_v41, %v4740_v8 }
 0x382   : > { %v3652_v21 = vpop.eup %3651  ;;  %5682 = vst [vmem:[#allocation17_spill] sm:$0xff] %v4737_v44  ;;  %v1397_v62 = vadd.f32 %v1396_v22, %v4737_v44 }
 0x383   : > { %v1187_v33 = vpop.xlane.xlu0 %1186 }
 0x384   : > { %3657 = vrcp.f32 %v1187_v33 }
 0x386   : > { %v3654_v33 = vpop.eup %3653 }
 0x387   : > { %v1190_v63 = vpop.xlane.xlu1 %1189  ;;  %v4756_v56 = vmul.f32 %v3654_v33, %v4470_v43  ;;  %v4760_v47 = vmul.f32 %v3654_v33, %v4468_v4 }
 0x388   : > { %3659 = vrcp.f32 %v1190_v63  ;;  %v4751_v63 = vmul.f32 %v3652_v21, %v4460_v50 }
 0x38a   : > { %v3656_v49 = vpop.eup %3655 }
 0x38b   : > { %v1193_v29 = vpop.xlane.xlu0 %1192  ;;  %v4764_v50 = vmul.f32 %v3656_v49, %v4484_v9  ;;  %v4768_v43 = vmul.f32 %v3656_v49, %v4482_v5 }
 0x38c   : > { %3661 = vrcp.f32 %v1193_v29  ;;  %v4746_v29 = vmul.f32 %v3652_v21, %v4462_v34 }
 0x38e   : > { %v3658_v34 = vpop.eup %3657 }
 0x38f   : > { %v1196_v27 = vpop.xlane.xlu1 %1195  ;;  %v4772_v44 = vmul.f32 %v3658_v34, %v4492_v3  ;;  %v4776_v9 = vmul.f32 %v3658_v34, %v4490_v46 }
 0x390   : > { %3663 = vrcp.f32 %v1196_v27  ;;  %v1360_v27 = vadd.f32 %v1359_v40, %v4743_v20 }
 0x392   : > { %v3660_v41 = vpop.eup %3659  ;;  %v1361_v22 = vadd.f32 %v1360_v27, %v4751_v63 }
 0x393   : > { %v1199_v48 = vpop.xlane.xlu0 %1198 }
 0x394   : > { %3665 = vrcp.f32 %v1199_v48  ;;  %v1398_v48 = vadd.f32 %v1397_v62, %v4746_v29  ;;  %v1362_v40 = vadd.f32 %v1361_v22, %v4760_v47  ;;  %v4780_v62 = vmul.f32 %v3660_v41, %v4506_v15 }
 0x396   : > { %v1399_v33 = vadd.f32 %v1398_v48, %v4756_v56  ;;  %v1363_v27 = vadd.f32 %v1362_v40, %v4768_v43 }
 0x397   : > { %v1202_v14 = vpop.xlane.xlu1 %1201 }
 0x398   : > { %3667 = vrcp.f32 %v1202_v14  ;;  %v3662_v14 = vpop.eup %3661  ;;  %v1400_v5 = vadd.f32 %v1399_v33, %v4764_v50  ;;  %v1364_v22 = vadd.f32 %v1363_v27, %v4776_v9 }
 0x399   : > { %v4788_v48 = vmul.f32 %v3662_v14, %v4514_v11 }
 0x39a   : > { %v3664_v49 = vpop.eup %3663  ;;  %v1401_v46 = vadd.f32 %v1400_v5, %v4772_v44 }
 0x39b   : > { %v1205_v55 = vpop.xlane.xlu0 %1204  ;;  %v4796_v33 = vmul.f32 %v3664_v49, %v4524_v13 }
 0x39c   : > { %3669 = vrcp.f32 %v1205_v55  ;;  %v4784_v55 = vmul.f32 %v3660_v41, %v4504_v6  ;;  %v1402_v6 = vadd.f32 %v1401_v46, %v4780_v62 }
 0x39d   : > { %5684 = vst [vmem:[#allocation19_spill] sm:$0xff] %v4796_v33 }
 0x39e   : > { %v3666_v34 = vpop.eup %3665  ;;  %v1365_v40 = vadd.f32 %v1364_v22, %v4784_v55 }
 0x39f   : > { %v1208_v21 = vpop.xlane.xlu1 %1207  ;;  %v4804_v5 = vmul.f32 %v3666_v34, %v4534_v7  ;;  %v4808_v13 = vmul.f32 %v3666_v34, %v4532_v26 }
 0x3a0   : > { %3671 = vrcp.f32 %v1208_v21  ;;  %v4792_v21 = vmul.f32 %v3662_v14, %v4512_v10  ;;  %v1403_v10 = vadd.f32 %v1402_v6, %v4788_v48 }
 0x3a1   : > { %5686 = vst [vmem:[#allocation21_spill] sm:$0xff] %v4804_v5  ;;  %5687 = vst [vmem:[#allocation22_spill] sm:$0xff] %v4808_v13 }
 0x3a2   : > { %5683 = vst [vmem:[#allocation18_spill] sm:$0xff] %v4792_v21  ;;  %v3668_v41 = vpop.eup %3667  ;;  %v1366_v27 = vadd.f32 %v1365_v40, %v4792_v21 }
 0x3a3   : > { %v1211_v4 = vpop.xlane.xlu0 %1210  ;;  %v4812_v46 = vmul.f32 %v3668_v41, %v4544_v58  ;;  %v4816_v7 = vmul.f32 %v3668_v41, %v4542_v28 }
 0x3a4   : > { %3673 = vrcp.f32 %v1211_v4  ;;  %v4800_v4 = vmul.f32 %v3664_v49, %v4522_v52  ;;  %v1404_v52 = vadd.f32 %v1403_v10, %v4796_v33 }
 0x3a5   : > { %5688 = vst [vmem:[#allocation23_spill] sm:$0xff] %v4812_v46  ;;  %5689 = vst [vmem:[#allocation24_spill] sm:$0xff] %v4816_v7 }
 0x3a6   : > { %5685 = vst [vmem:[#allocation20_spill] sm:$0xff] %v4800_v4  ;;  %v3670_v14 = vpop.eup %3669  ;;  %v1367_v22 = vadd.f32 %v1366_v27, %v4800_v4  ;;  %v1405_v26 = vadd.f32 %v1404_v52, %v4804_v5  ;;  %v5700_v4 = vld [vmem:[#allocation7_spill] sm:$0xff] }
 0x3a7   : > { %v1214_v3 = vpop.xlane.xlu1 %1213  ;;  %v4820_v6 = vmul.f32 %v3670_v14, %v4554_v23  ;;  %v4824_v58 = vmul.f32 %v3670_v14, %v4552_v0 }
 0x3a8   : > { %3675 = vrcp.f32 %v1214_v3  ;;  %v1368_v40 = vadd.f32 %v1367_v22, %v4808_v13  ;;  %v1406_v28 = vadd.f32 %v1405_v26, %v4812_v46  ;;  %v5698_v13 = vld [vmem:[#allocation4_spill] sm:$0xff] }
 0x3a9   : > { %5690 = vst [vmem:[#allocation25_spill] sm:$0xff] %v4820_v6  ;;  %5691 = vst [vmem:[#allocation26_spill] sm:$0xff] %v4824_v58 }
 0x3aa   : > { %v3672_v49 = vpop.eup %3671  ;;  %v1407_v0 = vadd.f32 %v1406_v28, %v4820_v6  ;;  %v4855_v28 = vld [vmem:[%s5558_s3] ss:$0 sm:$0xff] }
 0x3ab   : > { %v1217_v15 = vpop.xlane.xlu0 %1216  ;;  %v4828_v10 = vmul.f32 %v3672_v49, %v4564_v61  ;;  %v4832_v41 = vmul.f32 %v3672_v49, %v4562_v51 }
 0x3ac   : > { %3677 = vrcp.f32 %v1217_v15 }
 0x3ad   : > { %5692 = vst [vmem:[#allocation27_spill] sm:$0xff] %v4828_v10  ;;  %5693 = vst [vmem:[#allocation28_spill] sm:$0xff] %v4832_v41  ;;  %v1408_v51 = vadd.f32 %v1407_v0, %v4828_v10 }
 0x3ae   : > { %v3674_v34 = vpop.eup %3673 }
 0x3af   : > { %v1220_v11 = vpop.xlane.xlu1 %1219  ;;  %v4836_v52 = vmul.f32 %v3674_v34, %v4574_v24  ;;  %v4840_v14 = vmul.f32 %v3674_v34, %v4572_v17 }
 0x3b0   : > { %3679 = vrcp.f32 %v1220_v11 }
 0x3b1   : > { %v1409_v17 = vadd.f32 %v1408_v51, %v4836_v52 }
 0x3b2   : > { %v3676_v27 = vpop.eup %3675 }
 0x3b3   : > { %v1223_v3 = vpop.xlane.xlu0 %1222  ;;  %v4845_v26 = vmul.f32 %v3676_v27, %v4584_v1  ;;  %v4848_v24 = vmul.f32 %v3676_v27, %v4582_v35 }
 0x3b4   : > { %3681 = vrcp.f32 %v1223_v3  ;;  %v1369_v3 = vadd.f32 %v1368_v40, %v4816_v7 }
 0x3b6   : > { %v3678_v22 = vpop.eup %3677 }
 0x3b7   : > { %v1226_v15 = vpop.xlane.xlu1 %1225  ;;  %v4861_v1 = vmul.f32 %v3678_v22, %v4592_v39  ;;  %v1410_v39 = vadd.f32 %v1409_v17, %v4845_v26 }
 0x3b8   : > { %3683 = vrcp.f32 %v1226_v15  ;;  %v1370_v15 = vadd.f32 %v1369_v3, %v4824_v58  ;;  %v4858_v3 = vmul.f32 %v3678_v22, %v4594_v53 }
 0x3ba   : > { %v3680_v40 = vpop.eup %3679  ;;  %v1411_v7 = vadd.f32 %v1410_v39, %v4858_v3 }
 0x3bb   : > { %v1229_v11 = vpop.xlane.xlu0 %1228  ;;  %v4868_v53 = vmul.f32 %v3680_v40, %v4604_v37 }
 0x3bc   : > { %3685 = vrcp.f32 %v1229_v11  ;;  %v1371_v11 = vadd.f32 %v1370_v15, %v4832_v41 }
 0x3be   : > { %v1372_v35 = vadd.f32 %v1371_v11, %v4840_v14  ;;  %v3682_v15 = vpop.eup %3681 }
 0x3bf   : > { %v1232_v23 = vpop.xlane.xlu1 %1231  ;;  %v4878_v6 = vmul.f32 %v3682_v15, %v4614_v30 }
 0x3c0   : > { %3687 = vrcp.f32 %v1232_v23  ;;  %v1373_v22 = vadd.f32 %v1372_v35, %v4848_v24 }
 0x3c2   : > { %v3684_v58 = vpop.eup %3683  ;;  %v1374_v17 = vadd.f32 %v1373_v22, %v4861_v1  ;;  %v5694_v22 = vmov 0.0|0.0  }
 0x3c3   : > { %v1235_v61 = vpop.xlane.xlu0 %1234 }
 0x3c4   : > { %3689 = vrcp.f32 %v1235_v61  ;;  %v5602_v61 = vmov 0.0|0.0  }
 0x3c5   : > { %3204 = vmatprep.subr.bf16.mxu0 %v5602_v61  ;;  %v4874_v61 = vmul.f32 %v3680_v40, %v4602_v42 }
 0x3c6   : > { %v3686_v46 = vpop.eup %3685 }
 0x3c7   : > { %v1238_v49 = vpop.xlane.xlu1 %1237 }
 0x3c8   : > { %v2966_v34 = vpop.f32.mrb[32].mxu0  ;;  %3691 = vrcp.f32 %v1238_v49 }
 0x3c9   : > { %v1596_v27 = vadd.f32 %v2966_v34, %v4855_v28  ;;  %v1590_v0 = vpop.f32.mrb[33].mxu0 }
 0x3ca   : > { %v1591_v51 = vadd.f32 %v4855_v28, %v1590_v0 }
 0x3cb   : > { %v1241_v23 = vpop.xlane.xlu0 %1240 }
 0x3cc   : > { %v2969_v41 = vpop.f32.mrb[34].mxu0  ;;  %3693 = vrcp.f32 %v1241_v23  ;;  %v3205_v49 = vpack.c.bf16 %v1596_v27, %v1591_v51  ;;  %v4887_v27 = vmul.f32 %v3684_v58, %v4624_v54  ;;  %v1412_v51 = vadd.f32 %v1411_v7, %v4868_v53 }
 0x3cd   : > { %v1606_v11 = vadd.f32 %v2969_v41, %v4855_v28  ;;  %v1600_v34 = vpop.f32.mrb[35].mxu0  ;;  %v4883_v41 = vmul.f32 %v3682_v15, %v4612_v60  ;;  %v4893_v60 = vmul.f32 %v3684_v58, %v4622_v19  ;;  %v4897_v15 = vmul.f32 %v3686_v46, %v4634_v45 }
 0x3ce   : > { %v1601_v0 = vadd.f32 %v4855_v28, %v1600_v34  ;;  %3206 = vmatpush1.bf16.msra.mxu0 %v3205_v49  ;;  %v3688_v34 = vpop.eup %3687  ;;  %v1413_v54 = vadd.f32 %v1412_v51, %v4878_v6  ;;  %v4901_v7 = vmul.f32 %v3686_v46, %v4632_v2 }
 0x3cf   : > { %v1244_v10 = vpop.xlane.xlu1 %1243  ;;  %3207 = vmatprep.subr.bf16.mxu0 %v5694_v22  ;;  %v4912_v2 = vmul.f32 %v3688_v34, %v4642_v38 }
 0x3d0   : > { %v2972_v35 = vpop.f32.mrb[36].mxu0  ;;  %3695 = vrcp.f32 %v1244_v10  ;;  %v3208_v23 = vpack.c.bf16 %v1606_v11, %v1601_v0  ;;  %v1375_v10 = vadd.f32 %v1374_v17, %v4874_v61  ;;  %v3690_v0 = vpop.eup %3689  ;;  %v1414_v45 = vadd.f32 %v1413_v54, %v4887_v27 }
 0x3d1   : > { %v1616_v42 = vadd.f32 %v2972_v35, %v4855_v28  ;;  %v1610_v40 = vpop.f32.mrb[37].mxu0 }
 0x3d2   : > { %v1611_v39 = vadd.f32 %v4855_v28, %v1610_v40  ;;  %v1376_v40 = vadd.f32 %v1375_v10, %v4883_v41  ;;  %3209 = vmatpush1.bf16.msra.mxu0 %v3208_v23  ;;  %v4916_v23 = vmul.f32 %v3690_v0, %v4654_v36  ;;  %v4920_v10 = vmul.f32 %v3690_v0, %v4652_v16  ;;  %v5696_v16 = vld [vmem:[#allocation2_spill] sm:$0xff] }
 0x3d3   : > { %v1247_v37 = vpop.xlane.xlu0 %1246  ;;  %3210 = vmatprep.subr.bf16.mxu0 %v5694_v22 }
 0x3d4   : > { %3697 = vrcp.f32 %v1247_v37  ;;  %v3211_v11 = vpack.c.bf16 %v1616_v42, %v1611_v39  ;;  %v2975_v49 = vpop.f32.mrb[38].mxu0  ;;  %v4906_v37 = vmul.f32 %v3688_v34, %v4644_v25  ;;  %v3692_v42 = vpop.eup %3691  ;;  %v1377_v46 = vadd.f32 %v1376_v40, %v4893_v60 }
 0x3d5   : > { %v1626_v19 = vadd.f32 %v2975_v49, %v4855_v28  ;;  %v1620_v58 = vpop.f32.mrb[39].mxu0  ;;  %v4931_v0 = vmul.f32 %v3692_v42, %v5696_v16 }
 0x3d6   : > { %v1621_v17 = vadd.f32 %v4855_v28, %v1620_v58  ;;  %v3694_v39 = vpop.eup %3693  ;;  %v1378_v49 = vadd.f32 %v1377_v46, %v4901_v7  ;;  %3212 = vmatpush1.bf16.msra.mxu0 %v3211_v11  ;;  %v5697_v11 = vld [vmem:[#allocation5_spill] sm:$0xff] }
 0x3d7   : > { %v1250_v30 = vpop.xlane.xlu1 %1249  ;;  %3213 = vmatprep.subr.bf16.mxu0 %v5694_v22 }
 0x3d8   : > { %3699 = vrcp.f32 %v1250_v30  ;;  %v1415_v30 = vadd.f32 %v1414_v45, %v4897_v15  ;;  %v3214_v25 = vpack.c.bf16 %v1626_v19, %v1621_v17  ;;  %v2978_v51 = vpop.f32.mrb[40].mxu0  ;;  %v1379_v45 = vadd.f32 %v1378_v49, %v4912_v2 }
 0x3d9   : > { %v1636_v38 = vadd.f32 %v2978_v51, %v4855_v28  ;;  %v1630_v34 = vpop.f32.mrb[41].mxu0  ;;  %v4935_v17 = vmul.f32 %v3694_v39, %v5697_v11 }
 0x3da   : > { %v1416_v36 = vadd.f32 %v1415_v30, %v4906_v37  ;;  %v1631_v19 = vadd.f32 %v4855_v28, %v1630_v34  ;;  %v3696_v58 = vpop.eup %3695  ;;  %v4939_v30 = vmul.f32 %v3694_v39, %v5698_v13  ;;  %v1380_v5 = vadd.f32 %v1379_v45, %v4920_v10  ;;  %3215 = vmatpush1.bf16.msra.mxu0 %v3214_v25  ;;  %v5702_v13 = vld [vmem:[#allocation6_spill] sm:$0xff] }
 0x3db   : > { %v1253_v35 = vpop.xlane.xlu0 %1252  ;;  %v4944_v49 = vmul.f32 %v3696_v58, %v5700_v4  ;;  %3216 = vmatprep.subr.bf16.mxu0 %v5694_v22  ;;  %v4950_v39 = vmul.f32 %v3696_v58, %v5702_v13 }
 0x3dc   : > { %3701 = vrcp.f32 %v1253_v35  ;;  %v5695_v35 = vld [vmem:[#allocation3_spill] sm:$0xff]  ;;  %v1417_v46 = vadd.f32 %v1416_v36, %v4916_v23  ;;  %v3217_v51 = vpack.c.bf16 %v1636_v38, %v1631_v19  ;;  %v1381_v19 = vadd.f32 %v1380_v5, %v4931_v0 }
 0x3dd   : > { %v4925_v40 = vmul.f32 %v3692_v42, %v5695_v35  ;;  %v2981_v35 = vpop.f32.mrb[42].mxu0  ;;  %5699 = vst [vmem:[#allocation3_spill] sm:$0xff] %v4939_v30  ;;  %5701 = vst [vmem:[#allocation2_spill] sm:$0xff] %v4944_v49 }
 0x3de   : > { %v1646_v42 = vadd.f32 %v2981_v35, %v4855_v28  ;;  %v1640_v16 = vpop.f32.mrb[43].mxu0  ;;  %5703 = vst [vmem:[#allocation5_spill] sm:$0xff] %v4950_v39  ;;  %v1382_v33 = vadd.f32 %v1381_v19, %v4939_v30  ;;  %3218 = vmatpush1.bf16.msra.mxu0 %v3217_v51  ;;  %v5708_v51 = vld [vmem:[#allocation9_spill] sm:$0xff] }
 0x3df   : > { %v1256_v54 = vpop.xlane.xlu1 %1255  ;;  %v1418_v11 = vadd.f32 %v1417_v46, %v4925_v40  ;;  %v1641_v38 = vadd.f32 %v4855_v28, %v1640_v16  ;;  %3219 = vmatprep.subr.bf16.mxu0 %v5694_v22 }
 0x3e0   : > { %3703 = vrcp.f32 %v1256_v54  ;;  %v3698_v54 = vpop.eup %3697  ;;  %v2984_v35 = vpop.f32.mrb[44].mxu0 }
 0x3e1   : > { %v4954_v25 = vmul.f32 %v3698_v54, %v4689_v12  ;;  %v1419_v45 = vadd.f32 %v1418_v11, %v4935_v17  ;;  %v3220_v4 = vpack.c.bf16 %v1646_v42, %v1641_v38  ;;  %v4958_v46 = vmul.f32 %v3698_v54, %v4687_v32  ;;  %v1650_v13 = vpop.f32.mrb[45].mxu0 }
 0x3e2   : > { %v3700_v36 = vpop.eup %3699  ;;  %v1656_v58 = vadd.f32 %v2984_v35, %v4855_v28  ;;  %v1651_v42 = vadd.f32 %v4855_v28, %v1650_v13  ;;  %v1383_v54 = vadd.f32 %v1382_v33, %v4950_v39 }
 0x3e3   : > { %v1259_v34 = vpop.xlane.xlu0 %1258  ;;  %5704 = vst [vmem:[#allocation4_spill] sm:$0xff] %v4954_v25  ;;  %5705 = vst [vmem:[#allocation7_spill] sm:$0xff] %v4958_v46  ;;  %v4963_v5 = vmul.f32 %v3700_v36, %v4697_v57  ;;  %v1420_v12 = vadd.f32 %v1419_v45, %v4944_v49  ;;  %v4969_v32 = vmul.f32 %v3700_v36, %v4695_v31  ;;  %3221 = vmatpush1.bf16.msra.mxu0 %v3220_v4  ;;  %v5712_v36 = vld [vmem:[#allocation11_spill] sm:$0xff] }
 0x3e4   : > { %3705 = vrcp.f32 %v1259_v34  ;;  %v3223_v57 = vpack.c.bf16 %v1656_v58, %v1651_v42  ;;  %v2987_v35 = vpop.f32.mrb[46].mxu0  ;;  %v1384_v45 = vadd.f32 %v1383_v54, %v4958_v46  ;;  %3222 = vmatprep.subr.bf16.mxu0 %v5694_v22  ;;  %v5714_v58 = vld [vmem:[#allocation10_spill] sm:$0xff] }
 0x3e5   : > { %5706 = vst [vmem:[#allocation6_spill] sm:$0xff] %v4963_v5  ;;  %5707 = vst [vmem:[#allocation29_spill] sm:$0xff] %v4969_v32  ;;  %v1421_v19 = vadd.f32 %v1420_v12, %v4954_v25  ;;  %v1666_v13 = vadd.f32 %v2987_v35, %v4855_v28  ;;  %v1660_v31 = vpop.f32.mrb[47].mxu0 }
 0x3e6   : > { %v3702_v34 = vpop.eup %3701 }
 0x3e7   : > { %v1262_v16 = vpop.xlane.xlu1 %1261  ;;  %v4973_v38 = vmul.f32 %v3702_v34, %v5708_v51  ;;  %v1422_v33 = vadd.f32 %v1421_v19, %v4963_v5  ;;  %v1661_v51 = vadd.f32 %v4855_v28, %v1660_v31  ;;  %3224 = vmatpush1.bf16.msra.mxu0 %v3223_v57  ;;  %v5719_v57 = vld [vmem:[#allocation15_spill] sm:$0xff] }
 0x3e8   : > { %3707 = vrcp.f32 %v1262_v16  ;;  %v5710_v16 = vld [vmem:[#allocation8_spill] sm:$0xff]  ;;  %v2990_v35 = vpop.f32.mrb[48].mxu0  ;;  %3225 = vmatprep.subr.bf16.mxu0 %v5694_v22 }
 0x3e9   : > { %5709 = vst [vmem:[#allocation9_spill] sm:$0xff] %v4973_v38  ;;  %v4977_v30 = vmul.f32 %v3702_v34, %v5710_v16  ;;  %v1385_v34 = vadd.f32 %v1384_v45, %v4969_v32  ;;  %v1423_v4 = vadd.f32 %v1422_v33, %v4973_v38  ;;  %v3226_v54 = vpack.c.bf16 %v1666_v13, %v1661_v51  ;;  %v5716_v16 = vld [vmem:[#allocation12_spill] sm:$0xff] }
 0x3ea   : > { %v3704_v11 = vpop.eup %3703  ;;  %v1676_v31 = vadd.f32 %v2990_v35, %v4855_v28 }
 0x3eb   : > { %5711 = vst [vmem:[#allocation8_spill] sm:$0xff] %v4977_v30  ;;  %v4982_v49 = vmul.f32 %v3704_v11, %v5712_v36  ;;  %v4988_v12 = vmul.f32 %v3704_v11, %v5714_v58  ;;  %v5717_v36 = vld [vmem:[#allocation13_spill] sm:$0xff]  ;;  %v1386_v19 = vadd.f32 %v1385_v34, %v4977_v30  ;;  %v1670_v11 = vpop.f32.mrb[49].mxu0  ;;  %3227 = vmatpush1.bf16.msra.mxu0 %v3226_v54 }
 0x3ec   : > { %v1671_v45 = vadd.f32 %v4855_v28, %v1670_v11  ;;  %3228 = vmatprep.subr.bf16.mxu0 %v5694_v22 }
 0x3ed   : > { %5713 = vst [vmem:[#allocation11_spill] sm:$0xff] %v4982_v49  ;;  %5715 = vst [vmem:[#allocation10_spill] sm:$0xff] %v4988_v12  ;;  %v1424_v58 = vadd.f32 %v1423_v4, %v4982_v49  ;;  %v1387_v13 = vadd.f32 %v1386_v19, %v4988_v12 }
 0x3ee   : > { %v3706_v42 = vpop.eup %3705 }
 0x3ef   : > { %v4993_v46 = vmul.f32 %v3706_v42, %v5716_v16  ;;  %v4996_v25 = vmul.f32 %v3706_v42, %v5717_v36  ;;  %v3229_v16 = vpack.c.bf16 %v1676_v31, %v1671_v45  ;;  %v2993_v42 = vpop.f32.mrb[50].mxu0  ;;  %v5718_v36 = vld [vmem:[#allocation14_spill] sm:$0xff] }
 0x3f0   : > { %v1686_v4 = vadd.f32 %v2993_v42, %v4855_v28  ;;  %v1680_v11 = vpop.f32.mrb[51].mxu0 }
 0x3f1   : > { %v1425_v51 = vadd.f32 %v1424_v58, %v4996_v25  ;;  %v1388_v35 = vadd.f32 %v1387_v13, %v4993_v46  ;;  %v1681_v49 = vadd.f32 %v4855_v28, %v1680_v11  ;;  %v2996_v45 = vpop.f32.mrb[52].mxu0  ;;  %3230 = vmatpush1.bf16.msra.mxu0 %v3229_v16 }
 0x3f2   : > { %v3708_v33 = vpop.eup %3707  ;;  %v1690_v13 = vpop.f32.mrb[53].mxu0  ;;  %3231 = vmatprep.subr.bf16.mxu0 %v5694_v22 }
 0x3f3   : > { %v5006_v38 = vmul.f32 %v3708_v33, %v5718_v36  ;;  %v5009_v34 = vmul.f32 %v3708_v33, %v5719_v57  ;;  %v3232_v58 = vpack.c.bf16 %v1686_v4, %v1681_v49  ;;  %v1696_v33 = vadd.f32 %v2996_v45, %v4855_v28 }
 0x3f4   : > { %v1691_v54 = vadd.f32 %v4855_v28, %v1690_v13  ;;  %v2999_v30 = vpop.f32.mrb[54].mxu0 }
 0x3f5   : > { %v1426_v19 = vadd.f32 %v1425_v51, %v5009_v34  ;;  %v1389_v31 = vadd.f32 %v1388_v35, %v5006_v38  ;;  %3233 = vmatpush1.bf16.msra.mxu0 %v3232_v58  ;;  %v1706_v49 = vadd.f32 %v2999_v30, %v4855_v28  ;;  %v1700_v35 = vpop.f32.mrb[55].mxu0 }
 0x3f6   : > { %v3235_v11 = vpack.c.bf16 %v1696_v33, %v1691_v54  ;;  %v1701_v4 = vadd.f32 %v4855_v28, %v1700_v35  ;;  %3234 = vmatprep.subr.bf16.mxu0 %v5694_v22 }
 0x3f7   : > { %v1427_v36 = vrot.slane %v1426_v19, 4  ;;  %v1390_v12 = vrot.slane %v1389_v31, 4 }
 0x3f8   : > { %v3238_v5 = vpack.c.bf16 %v1706_v49, %v1701_v4 }
 0x3f9   : > { %v1428_v42 = vadd.f32 %v1427_v36, %v1426_v19  ;;  %v1391_v57 = vadd.f32 %v1390_v12, %v1389_v31  ;;  %v3002_v13 = vpop.f32.mrb[56].mxu0  ;;  %3236 = vmatpush1.bf16.msra.mxu0 %v3235_v11 }
 0x3fa   : > { %v1716_v12 = vadd.f32 %v3002_v13, %v4855_v28  ;;  %v1710_v19 = vpop.f32.mrb[57].mxu0  ;;  %3237 = vmatprep.subr.bf16.mxu0 %v5694_v22 }
 0x3fb   : > { %v1429_v32 = vrot.slane %v1428_v42, 2  ;;  %v1392_v51 = vrot.slane %v1391_v57, 2  ;;  %v1711_v31 = vadd.f32 %v4855_v28, %v1710_v19 }
 0x3fd   : > { %v1430_v16 = vadd.f32 %v1429_v32, %v1428_v42  ;;  %v1393_v45 = vadd.f32 %v1392_v51, %v1391_v57  ;;  %v3241_v36 = vpack.c.bf16 %v1716_v12, %v1711_v31  ;;  %v3005_v33 = vpop.f32.mrb[58].mxu0  ;;  %3239 = vmatpush1.bf16.msra.mxu0 %v3238_v5 }
 0x3fe   : > { %v1726_v32 = vadd.f32 %v3005_v33, %v4855_v28  ;;  %v1720_v42 = vpop.f32.mrb[59].mxu0  ;;  %3240 = vmatprep.subr.bf16.mxu0 %v5694_v22 }
 0x3ff   : > { %v1431_v39 = vrot.slane %v1430_v16, 1  ;;  %v1394_v21 = vrot.slane %v1393_v45, 1  ;;  %v1721_v57 = vadd.f32 %v4855_v28, %v1720_v42 }
 0x401   : > { %v1432_v30 = vadd.f32 %v1431_v39, %v1430_v16  ;;  %v1395_v58 = vadd.f32 %v1394_v21, %v1393_v45  ;;  %v3244_v11 = vpack.c.bf16 %v1726_v32, %v1721_v57  ;;  %3242 = vmatpush1.bf16.msra.mxu0 %v3241_v36 }
 0x402   : > { %v3008_v51 = vpop.f32.mrb[60].mxu0  ;;  %3243 = vmatprep.subr.bf16.mxu0 %v5694_v22 }
 0x403   : > { %v1434_v54 = vadd.f32 1e-09, %v1432_v30  ;;  %v1433_v35 = vadd.f32 1e-09, %v1395_v58  ;;  %v1736_v39 = vadd.f32 %v3008_v51, %v4855_v28  ;;  %v1730_v21 = vpop.f32.mrb[61].mxu0 }
 0x404   : > { %v1731_v49 = vadd.f32 %v4855_v28, %v1730_v21 }
 0x405   : > { %3709 = vrcp.f32 %v1434_v54  ;;  %3245 = vmatpush1.bf16.msra.mxu0 %v3244_v11 }
 0x406   : > { %3711 = vrcp.f32 %v1433_v35  ;;  %v3247_v5 = vpack.c.bf16 %v1736_v39, %v1731_v49  ;;  %v3011_v4 = vpop.f32.mrb[62].mxu0  ;;  %3246 = vmatprep.subr.bf16.mxu0 %v5694_v22 }
 0x407   : > { %v1746_v16 = vadd.f32 %v3011_v4, %v4855_v28  ;;  %v1740_v45 = vpop.f32.mrb[63].mxu0 }
 0x408   : > { %v1741_v13 = vadd.f32 %v4855_v28, %v1740_v45 }
 0x409   : > { %3248 = vmatpush1.bf16.msra.mxu0 %v3247_v5 }
 0x40a   : > { %v3250_v12 = vpack.c.bf16 %v1746_v16, %v1741_v13  ;;  %3249 = vmatprep.subr.bf16.mxu0 %v5694_v22  ;;  %v5721_v22 = vld [vmem:[#allocation17_spill] sm:$0xff] }
 0x40d   : > { %3251 = vmatpush1.bf16.msra.mxu0 %v3250_v12 }
 0x40f   : > { %v5035_v19 = vpop.eup %3709 }
 0x410   : > { %v5037_v31 = vpop.eup %3711  ;;  %v1438_v30 = vmul.f32 %v5035_v19, %v4734_v59  ;;  %v1470_v58 = vmul.f32 %v5035_v19, %v4858_v3  ;;  %v1440_v54 = vmul.f32 %v5035_v19, %v4728_v18  ;;  %v1472_v35 = vmul.f32 %v5035_v19, %v4868_v53  ;;  %v5720_v59 = vld [vmem:[#allocation16_spill] sm:$0xff] }
 0x411   : > { %v1436_v36 = vmul.f32 %v5037_v31, %v4740_v8  ;;  %v1469_v28 = vmul.f32 %v5037_v31, %v4861_v1  ;;  %v1439_v42 = vmul.f32 %v5037_v31, %v5720_v59  ;;  %v1471_v3 = vmul.f32 %v5037_v31, %v4874_v61  ;;  %v5723_v59 = vld [vmem:[#allocation3_spill] sm:$0xff] }
 0x412   : > { %v3405_v33 = vpack.i.bf16 %v1438_v30, %v1470_v58  ;;  %v3407_v8 = vpack.i.bf16 %v1440_v54, %v1472_v35  ;;  %v1442_v1 = vmul.f32 %v5035_v19, %v5721_v22  ;;  %v1474_v18 = vmul.f32 %v5035_v19, %v4878_v6 }
 0x413   : > { %v3293_v32 = vpack.i.bf16 %v1436_v36, %v1469_v28  ;;  %v3295_v57 = vpack.i.bf16 %v1439_v42, %v1471_v3  ;;  %v1441_v53 = vmul.f32 %v5037_v31, %v4743_v20  ;;  %v1473_v11 = vmul.f32 %v5037_v31, %v4883_v41 }
 0x414   : > { %3406 = vxpose.xlu1.b32.start [1/16] %v3405_v33, 128  ;;  %v3409_v61 = vpack.i.bf16 %v1442_v1, %v1474_v18  ;;  %v1444_v51 = vmul.f32 %v5035_v19, %v4746_v29  ;;  %v1476_v39 = vmul.f32 %v5035_v19, %v4887_v27  ;;  %v1443_v6 = vmul.f32 %v5037_v31, %v4751_v63  ;;  %v5726_v1 = vld [vmem:[#allocation20_spill] sm:$0xff]  ;;  %v5727_v18 = vld [vmem:[#allocation5_spill] sm:$0xff] }
 0x415   : > { %3294 = vxpose.xlu0.b32.start [1/16] %v3293_v32, 128  ;;  %v3297_v21 = vpack.i.bf16 %v1441_v53, %v1473_v11  ;;  %v1475_v49 = vmul.f32 %v5037_v31, %v4893_v60  ;;  %v1446_v41 = vmul.f32 %v5035_v19, %v4756_v56  ;;  %v1478_v5 = vmul.f32 %v5035_v19, %v4897_v15  ;;  %v5722_v32 = vld [vmem:[#allocation18_spill] sm:$0xff]  ;;  %v5728_v11 = vld [vmem:[#allocation21_spill] sm:$0xff] }
 0x416   : > { %v3411_v20 = vpack.i.bf16 %v1444_v51, %v1476_v39  ;;  %v1445_v27 = vmul.f32 %v5037_v31, %v4760_v47  ;;  %v1477_v4 = vmul.f32 %v5037_v31, %v4901_v7  ;;  %v1448_v63 = vmul.f32 %v5035_v19, %v4764_v50  ;;  %v5729_v51 = vld [vmem:[#allocation4_spill] sm:$0xff] }
 0x417   : > { %v3299_v29 = vpack.i.bf16 %v1443_v6, %v1475_v49  ;;  %v1480_v60 = vmul.f32 %v5035_v19, %v4906_v37  ;;  %v3413_v16 = vpack.i.bf16 %v1446_v41, %v1478_v5  ;;  %v1447_v15 = vmul.f32 %v5037_v31, %v4768_v43  ;;  %v5730_v6 = vld [vmem:[#allocation22_spill] sm:$0xff] }
 0x418   : > { %3408 = vxpose.xlu1.b32.cont [2/16] %v3407_v8, 128  ;;  %v3301_v56 = vpack.i.bf16 %v1445_v27, %v1477_v4  ;;  %v1479_v45 = vmul.f32 %v5037_v31, %v4912_v2  ;;  %v1450_v47 = vmul.f32 %v5035_v19, %v4772_v44  ;;  %v1482_v7 = vmul.f32 %v5035_v19, %v4916_v23  ;;  %v5725_v8 = vld [vmem:[#allocation2_spill] sm:$0xff] }
 0x419   : > { %3296 = vxpose.xlu0.b32.cont [2/16] %v3295_v57, 128  ;;  %v5094_v50 = vmul.f32 %v5035_v19, %v4836_v52  ;;  %v5098_v37 = vmul.f32 %v5035_v19, %v4996_v25  ;;  %v3415_v43 = vpack.i.bf16 %v1448_v63, %v1480_v60  ;;  %v5102_v2 = vmul.f32 %v5037_v31, %v4840_v14  ;;  %v5733_v4 = vld [vmem:[#allocation6_spill] sm:$0xff] }
 0x41a   : > { %v5106_v44 = vmul.f32 %v5037_v31, %v4993_v46  ;;  %v5110_v23 = vmul.f32 %v5035_v19, %v4845_v26  ;;  %v1449_v52 = vmul.f32 %v5037_v31, %v4776_v9  ;;  %v5118_v13 = vmul.f32 %v5035_v19, %v5009_v34 }
 0x41b   : > { %v3433_v25 = vpack.i.bf16 %v5094_v50, %v5098_v37  ;;  %v5122_v14 = vmul.f32 %v5037_v31, %v4848_v24  ;;  %v3303_v46 = vpack.i.bf16 %v1447_v15, %v1479_v45  ;;  %v1481_v12 = vmul.f32 %v5037_v31, %v4920_v10  ;;  %v5735_v15 = vld [vmem:[#allocation29_spill] sm:$0xff]  ;;  %v2134_v50 = vld [vmem:[%s5559_s4] sm:$0xff]  ;;  %v2135_v37 = vld [vmem:[%s5559_s4 + $0x8] sm:$0xff] }
 0x41c   : > { %3410 = vxpose.xlu1.b32.cont [3/16] %v3409_v61, 128  ;;  %v3321_v26 = vpack.i.bf16 %v5102_v2, %v5106_v44  ;;  %v5130_v9 = vmul.f32 %v5037_v31, %v5006_v38  ;;  %v3435_v34 = vpack.i.bf16 %v5110_v23, %v5118_v13  ;;  %v3417_v30 = vpack.i.bf16 %v1450_v47, %v1482_v7  ;;  %v5736_v7 = vld [vmem:[#allocation25_spill] sm:$0xff]  ;;  %v2136_v2 = vld [vmem:[%s5559_s4 + $0x10] sm:$0xff] }
 0x41d   : > { %3298 = vxpose.xlu0.b32.cont [3/16] %v3297_v21, 128  ;;  %v1452_v58 = vmul.f32 %v5035_v19, %v4780_v62  ;;  %v1484_v10 = vmul.f32 %v5035_v19, %v4925_v40  ;;  %v3305_v36 = vpack.i.bf16 %v1449_v52, %v1481_v12  ;;  %v1451_v38 = vmul.f32 %v5037_v31, %v4784_v55  ;;  %v5737_v52 = vld [vmem:[#allocation9_spill] sm:$0xff] }
 0x41e   : > { %v3323_v24 = vpack.i.bf16 %v5122_v14, %v5130_v9  ;;  %v1483_v28 = vmul.f32 %v5037_v31, %v4931_v0  ;;  %v1454_v54 = vmul.f32 %v5035_v19, %v4788_v48  ;;  %v1486_v35 = vmul.f32 %v5035_v19, %v4935_v17  ;;  %v5724_v0 = vld [vmem:[#allocation19_spill] sm:$0xff]  ;;  %v2138_v9 = vld [vmem:[%s5559_s4 + $0x20] sm:$0xff] }
 0x41f   : > { %v3419_v33 = vpack.i.bf16 %v1452_v58, %v1484_v10  ;;  %v1453_v40 = vmul.f32 %v5037_v31, %v5722_v32  ;;  %v1485_v42 = vmul.f32 %v5037_v31, %v5723_v59  ;;  %v1456_v3 = vmul.f32 %v5035_v19, %v5724_v0  ;;  %v5739_v10 = vld [vmem:[#allocation8_spill] sm:$0xff]  ;;  %v5743_v59 = vld [vmem:[#allocation10_spill] sm:$0xff] }
 0x420   : > { %3412 = vxpose.xlu1.b32.cont [4/16] %v3411_v20, 128  ;;  %v3307_v62 = vpack.i.bf16 %v1451_v38, %v1483_v28  ;;  %v3421_v55 = vpack.i.bf16 %v1454_v54, %v1486_v35  ;;  %v1488_v22 = vmul.f32 %v5035_v19, %v5725_v8  ;;  %v1455_v17 = vmul.f32 %v5037_v31, %v5726_v1  ;;  %v5731_v20 = vld [vmem:[#allocation7_spill] sm:$0xff]  ;;  %v5742_v32 = vld [vmem:[#allocation28_spill] sm:$0xff] }
 0x421   : > { %3300 = vxpose.xlu0.b32.cont [4/16] %v3299_v29, 128  ;;  %v3309_v48 = vpack.i.bf16 %v1453_v40, %v1485_v42  ;;  %v1487_v57 = vmul.f32 %v5037_v31, %v5727_v18  ;;  %v1458_v61 = vmul.f32 %v5035_v19, %v5728_v11  ;;  %v1490_v39 = vmul.f32 %v5035_v19, %v5729_v51  ;;  %v5732_v29 = vld [vmem:[#allocation23_spill] sm:$0xff]  ;;  %v2140_v1 = vld [vmem:[%s5559_s4 + $0x30] sm:$0xff]  ;;  %v2142_v51 = vld [vmem:[%s5559_s4 + $0x40] sm:$0xff] }
 0x422   : > { %v3423_v53 = vpack.i.bf16 %v1456_v3, %v1488_v22  ;;  %v1457_v49 = vmul.f32 %v5037_v31, %v5730_v6  ;;  %v1489_v41 = vmul.f32 %v5037_v31, %v5731_v20  ;;  %v1460_v27 = vmul.f32 %v5035_v19, %v5732_v29  ;;  %v5740_v28 = vld [vmem:[#allocation27_spill] sm:$0xff]  ;;  %v2145_v29 = vld [vmem:[%s5559_s4 + $0x58] sm:$0xff] }
 0x423   : > { %v3311_v21 = vpack.i.bf16 %v1455_v17, %v1487_v57  ;;  %v3425_v5 = vpack.i.bf16 %v1458_v61, %v1490_v39  ;;  %v1492_v63 = vmul.f32 %v5035_v19, %v5733_v4  ;;  %v1491_v45 = vmul.f32 %v5037_v31, %v5735_v15  ;;  %v5741_v54 = vld [vmem:[#allocation11_spill] sm:$0xff]  ;;  %v2141_v17 = vld [vmem:[%s5559_s4 + $0x38] sm:$0xff] }
 0x424   : > { %3414 = vxpose.xlu1.b32.cont [5/16] %v3413_v16, 128  ;;  %v3313_v60 = vpack.i.bf16 %v1457_v49, %v1489_v41  ;;  %v5734_v16 = vld [vmem:[#allocation24_spill] sm:$0xff]  ;;  %v1496_v35 = vmul.f32 %v5035_v19, %v5741_v54  ;;  %v1463_v40 = vmul.f32 %v5037_v31, %v5742_v32  ;;  %v1495_v42 = vmul.f32 %v5037_v31, %v5743_v59  ;;  %v2143_v39 = vld [vmem:[%s5559_s4 + $0x48] sm:$0xff] }
 0x425   : > { %3302 = vxpose.xlu0.b32.cont [5/16] %v3301_v56, 128  ;;  %v1459_v56 = vmul.f32 %v5037_v31, %v5734_v16  ;;  %v3427_v47 = vpack.i.bf16 %v1460_v27, %v1492_v63  ;;  %v3252_v13 = vpack.c.bf16 %v2135_v37, %v2134_v50  ;;  %v3264_v11 = vpack.c.bf16 %v2141_v17, %v2140_v1  ;;  %v2147_v15 = vld [vmem:[%s5559_s4 + $0x68] sm:$0xff] }
 0x426   : > { %v3319_v0 = vpack.i.bf16 %v1463_v40, %v1495_v42  ;;  %v3268_v20 = vpack.c.bf16 %v2143_v39, %v2142_v51 }
 0x427   : > { %v3315_v12 = vpack.i.bf16 %v1459_v56, %v1491_v45  ;;  %3253 = vmatprep.subr.bf16.mxu1 %v3252_v13  ;;  %v2146_v56 = vld [vmem:[%s5559_s4 + $0x60] sm:$0xff] }
 0x428   : > { %3416 = vxpose.xlu1.b32.cont [6/16] %v3415_v43, 128  ;;  %v1462_v43 = vmul.f32 %v5035_v19, %v5736_v7  ;;  %3255 = vmatpush3.bf16.msra.mxu1 %v3252_v13 }
 0x429   : > { %3304 = vxpose.xlu0.b32.cont [6/16] %v3303_v46, 128  ;;  %v1494_v46 = vmul.f32 %v5035_v19, %v5737_v52 }
 0x42b   : > { %v3429_v38 = vpack.i.bf16 %v1462_v43, %v1494_v46  ;;  %v3276_v43 = vpack.c.bf16 %v2147_v15, %v2146_v56 }
 0x42c   : > { %3418 = vxpose.xlu1.b32.cont [7/16] %v3417_v30, 128  ;;  %v5738_v30 = vld [vmem:[#allocation26_spill] sm:$0xff] }
 0x42d   : > { %3306 = vxpose.xlu0.b32.cont [7/16] %v3305_v36, 128  ;;  %v1461_v58 = vmul.f32 %v5037_v31, %v5738_v30  ;;  %v1493_v36 = vmul.f32 %v5037_v31, %v5739_v10 }
 0x430   : > { %3420 = vxpose.xlu1.b32.cont [8/16] %v3419_v33, 128  ;;  %v1464_v33 = vmul.f32 %v5035_v19, %v5740_v28 }
 0x431   : > { %3308 = vxpose.xlu0.b32.cont [8/16] %v3307_v62, 128  ;;  %v3317_v62 = vpack.i.bf16 %v1461_v58, %v1493_v36 }
 0x434   : > { %3422 = vxpose.xlu1.b32.cont [9/16] %v3421_v55, 128  ;;  %v3431_v55 = vpack.i.bf16 %v1464_v33, %v1496_v35 }
 0x435   : > { %3310 = vxpose.xlu0.b32.cont [9/16] %v3309_v48, 128 }
 0x438   : > { %3424 = vxpose.xlu1.b32.cont [10/16] %v3423_v53, 128 }
 0x439   : > { %3312 = vxpose.xlu0.b32.cont [10/16] %v3311_v21, 128 }
 0x43c   : > { %3426 = vxpose.xlu1.b32.cont [11/16] %v3425_v5, 128  ;;  %v2144_v5 = vld [vmem:[%s5559_s4 + $0x50] sm:$0xff] }
 0x43d   : > { %3314 = vxpose.xlu0.b32.cont [11/16] %v3313_v60, 128  ;;  %v3272_v60 = vpack.c.bf16 %v2145_v29, %v2144_v5 }
 0x440   : > { %3428 = vxpose.xlu1.b32.cont [12/16] %v3427_v47, 128 }
 0x441   : > { %3316 = vxpose.xlu0.b32.cont [12/16] %v3315_v12, 128 }
 0x444   : > { %3430 = vxpose.xlu1.b32.cont [13/16] %v3429_v38, 128 }
 0x445   : > { %3318 = vxpose.xlu0.b32.cont [13/16] %v3317_v62, 128 }
 0x448   : > { %3432 = vxpose.xlu1.b32.cont [14/16] %v3431_v55, 128 }
 0x449   : > { %3320 = vxpose.xlu0.b32.cont [14/16] %v3319_v0, 128 }
 0x44c   : > { %3434 = vxpose.xlu1.b32.cont [15/16] %v3433_v25, 128  ;;  %v2137_v25 = vld [vmem:[%s5559_s4 + $0x18] sm:$0xff] }
 0x44d   : > { %3322 = vxpose.xlu0.b32.cont [15/16] %v3321_v26, 128  ;;  %v3256_v14 = vpack.c.bf16 %v2137_v25, %v2136_v2 }
 0x44f   : > { %3257 = vmatprep.subr.bf16.mxu1 %v3256_v14 }
 0x450   : > { %3436 = vxpose.xlu1.b32.end [16/16] %v3435_v34, 128  ;;  %v2139_v34 = vld [vmem:[%s5559_s4 + $0x28] sm:$0xff]  ;;  %3259 = vmatpush3.bf16.msra.mxu1 %v3256_v14 }
 0x451   : > { %3324 = vxpose.xlu0.b32.end [16/16] %v3323_v24, 128  ;;  %v3260_v22 = vpack.c.bf16 %v2139_v34, %v2138_v9 }
 0x453   : > { %3261 = vmatprep.subr.bf16.mxu1 %v3260_v22 }
 0x454   : > { %3263 = vmatpush3.bf16.msra.mxu1 %v3260_v22 }
 0x455   : > { %3265 = vmatprep.subr.bf16.mxu1 %v3264_v11 }
 0x458   : > { %3267 = vmatpush3.bf16.msra.mxu1 %v3264_v11 }
 0x459   : > { %3269 = vmatprep.subr.bf16.mxu1 %v3268_v20 }
 0x45c   : > { %3271 = vmatpush3.bf16.msra.mxu1 %v3268_v20 }
 0x45d   : > { %3273 = vmatprep.subr.bf16.mxu1 %v3272_v60 }
 0x460   : > { %3275 = vmatpush3.bf16.msra.mxu1 %v3272_v60 }
 0x461   : > { %3277 = vmatprep.subr.bf16.mxu1 %v3276_v43 }
 0x464   : > { %3279 = vmatpush3.bf16.msra.mxu1 %v3276_v43 }
 0x494   : > { %v5204_v19 = vpop.trf.xlu1 }
 0x495   : > { %v3325_v31 = vpop.trf.xlu0  ;;  %v3441_v39 = vunpack.i.h.bf16 %v5204_v19 }
 0x496   : > { %v3329_v44 = vunpack.i.h.bf16 %v3325_v31  ;;  %v3326_v23 = vunpack.i.l.bf16 %v3325_v31 }
 0x498   : > { %1941 = vmatprep.mubr.f32.mxu0 %v3326_v23  ;;  %v5218_v26 = vpop.trf.xlu1 }
 0x499   : > { %v3330_v24 = vpop.trf.xlu0  ;;  %1942 = vmatmul.mubr.f32.vlgmr.msra.gmra.mrb[64].mxu0 %v3329_v44 }
 0x49a   : > { %v3331_v3 = vunpack.i.l.bf16 %v3330_v24  ;;  %v3334_v8 = vunpack.i.h.bf16 %v3330_v24 }
 0x49c   : > { %1946 = vmatprep.mubr.f32.mxu0 %v3331_v3  ;;  %v5226_v48 = vpop.trf.xlu1 }
 0x49d   : > { %v3335_v18 = vpop.trf.xlu0  ;;  %1947 = vmatmul.mubr.f32.gmra.mrb[66].mxu0 %v3334_v8  ;;  %v3451_v20 = vunpack.i.h.bf16 %v5226_v48 }
 0x49e   : > { %v3336_v57 = vunpack.i.l.bf16 %v3335_v18  ;;  %v3339_v53 = vunpack.i.h.bf16 %v3335_v18 }
 0x4a0   : > { %1951 = vmatprep.mubr.f32.mxu0 %v3336_v57  ;;  %v5234_v61 = vpop.trf.xlu1 }
 0x4a1   : > { %v3340_v21 = vpop.trf.xlu0  ;;  %1952 = vmatmul.mubr.f32.gmra.mrb[68].mxu0 %v3339_v53  ;;  %v3438_v53 = vunpack.i.l.bf16 %v5204_v19  ;;  %v3453_v5 = vunpack.i.l.bf16 %v5234_v61  ;;  %v3456_v29 = vunpack.i.h.bf16 %v5234_v61  ;;  %v2148_v61 = vld [vmem:[%s5559_s4 + $0x70] sm:$0xff] }
 0x4a2   : > { %v3341_v6 = vunpack.i.l.bf16 %v3340_v21  ;;  %v3344_v49 = vunpack.i.h.bf16 %v3340_v21  ;;  %v3443_v21 = vunpack.i.l.bf16 %v5218_v26 }
 0x4a4   : > { %1956 = vmatprep.mubr.f32.mxu0 %v3341_v6  ;;  %v5242_v41 = vpop.trf.xlu1  ;;  %v3446_v6 = vunpack.i.h.bf16 %v5218_v26 }
 0x4a5   : > { %v3345_v27 = vpop.trf.xlu0  ;;  %1957 = vmatmul.mubr.f32.gmra.mrb[70].mxu0 %v3344_v49  ;;  %v3448_v49 = vunpack.i.l.bf16 %v5226_v48  ;;  %v3458_v19 = vunpack.i.l.bf16 %v5242_v41 }
 0x4a6   : > { %v3346_v4 = vunpack.i.l.bf16 %v3345_v27  ;;  %v3349_v63 = vunpack.i.h.bf16 %v3345_v27  ;;  %v3461_v27 = vunpack.i.h.bf16 %v5242_v41  ;;  %v2149_v41 = vld [vmem:[%s5559_s4 + $0x78] sm:$0xff] }
 0x4a7   : > { %v3280_v56 = vpack.c.bf16 %v2149_v41, %v2148_v61 }
 0x4a8   : > { %1961 = vmatprep.mubr.f32.mxu0 %v3346_v4  ;;  %v5250_v16 = vpop.trf.xlu1 }
 0x4a9   : > { %v3350_v45 = vpop.trf.xlu0  ;;  %1962 = vmatmul.mubr.f32.gmra.mrb[72].mxu0 %v3349_v63  ;;  %v3463_v26 = vunpack.i.l.bf16 %v5250_v16  ;;  %v3466_v4 = vunpack.i.h.bf16 %v5250_v16  ;;  %3281 = vmatprep.subr.bf16.mxu1 %v3280_v56 }
 0x4aa   : > { %v3351_v47 = vunpack.i.l.bf16 %v3350_v45  ;;  %v3354_v7 = vunpack.i.h.bf16 %v3350_v45  ;;  %3283 = vmatpush3.bf16.msra.mxu1 %v3280_v56 }
 0x4ac   : > { %1966 = vmatprep.mubr.f32.mxu0 %v3351_v47  ;;  %v5258_v52 = vpop.trf.xlu1 }
 0x4ad   : > { %v3355_v46 = vpop.trf.xlu0  ;;  %1967 = vmatmul.mubr.f32.gmra.mrb[74].mxu0 %v3354_v7  ;;  %v3468_v48 = vunpack.i.l.bf16 %v5258_v52  ;;  %v3471_v63 = vunpack.i.h.bf16 %v5258_v52 }
 0x4ae   : > { %v3356_v12 = vunpack.i.l.bf16 %v3355_v46  ;;  %v3359_v30 = vunpack.i.h.bf16 %v3355_v46 }
 0x4b0   : > { %1971 = vmatprep.mubr.f32.mxu0 %v3356_v12  ;;  %v5260_v58 = vpop.trf.xlu1 }
 0x4b1   : > { %v3360_v10 = vpop.trf.xlu0  ;;  %1972 = vmatmul.mubr.f32.gmra.mrb[76].mxu0 %v3359_v30  ;;  %v3473_v60 = vunpack.i.l.bf16 %v5260_v58  ;;  %v3476_v16 = vunpack.i.h.bf16 %v5260_v58 }
 0x4b2   : > { %v3361_v36 = vunpack.i.l.bf16 %v3360_v10  ;;  %v3364_v38 = vunpack.i.h.bf16 %v3360_v10 }
 0x4b4   : > { %1976 = vmatprep.mubr.f32.mxu0 %v3361_v36  ;;  %v5262_v28 = vpop.trf.xlu1 }
 0x4b5   : > { %v3365_v33 = vpop.trf.xlu0  ;;  %1977 = vmatmul.mubr.f32.gmra.mrb[78].mxu0 %v3364_v38  ;;  %v3478_v15 = vunpack.i.l.bf16 %v5262_v28  ;;  %v3481_v45 = vunpack.i.h.bf16 %v5262_v28 }
 0x4b6   : > { %v3366_v54 = vunpack.i.l.bf16 %v3365_v33  ;;  %v3369_v35 = vunpack.i.h.bf16 %v3365_v33 }
 0x4b8   : > { %1981 = vmatprep.mubr.f32.mxu0 %v3366_v54  ;;  %v5264_v62 = vpop.trf.xlu1 }
 0x4b9   : > { %v3370_v32 = vpop.trf.xlu0  ;;  %1982 = vmatmul.mubr.f32.gmra.mrb[80].mxu0 %v3369_v35  ;;  %v3483_v47 = vunpack.i.l.bf16 %v5264_v62  ;;  %v3486_v7 = vunpack.i.h.bf16 %v5264_v62  ;;  %v5317_v62 = vld [vmem:[%s3846_s14] sm:$0xff] }
 0x4ba   : > { %v3371_v40 = vunpack.i.l.bf16 %v3370_v32  ;;  %v3374_v59 = vunpack.i.h.bf16 %v3370_v32 }
 0x4bc   : > { %1986 = vmatprep.mubr.f32.mxu0 %v3371_v40  ;;  %v5266_v42 = vpop.trf.xlu1 }
 0x4bd   : > { %v3375_v55 = vpop.trf.xlu0  ;;  %1987 = vmatmul.mubr.f32.gmra.mrb[82].mxu0 %v3374_v59  ;;  %v3488_v43 = vunpack.i.l.bf16 %v5266_v42  ;;  %v3491_v52 = vunpack.i.h.bf16 %v5266_v42  ;;  %v5321_v42 = vld [vmem:[%s3846_s14 + $0x8] sm:$0xff] }
 0x4be   : > { %v3376_v0 = vunpack.i.l.bf16 %v3375_v55  ;;  %v3379_v31 = vunpack.i.h.bf16 %v3375_v55 }
 0x4c0   : > { %1991 = vmatprep.mubr.f32.mxu0 %v3376_v0  ;;  %v5268_v50 = vpop.trf.xlu1 }
 0x4c1   : > { %v3380_v37 = vpop.trf.xlu0  ;;  %1992 = vmatmul.mubr.f32.gmra.mrb[84].mxu0 %v3379_v31  ;;  %v3493_v46 = vunpack.i.l.bf16 %v5268_v50  ;;  %v3496_v12 = vunpack.i.h.bf16 %v5268_v50  ;;  %v5325_v50 = vld [vmem:[%s3846_s14 + $0x10] sm:$0xff] }
 0x4c2   : > { %v3381_v2 = vunpack.i.l.bf16 %v3380_v37  ;;  %v3384_v44 = vunpack.i.h.bf16 %v3380_v37 }
 0x4c4   : > { %1996 = vmatprep.mubr.f32.mxu0 %v3381_v2  ;;  %v5270_v23 = vpop.trf.xlu1 }
 0x4c5   : > { %v3385_v25 = vpop.trf.xlu0  ;;  %1997 = vmatmul.mubr.f32.gmra.mrb[86].mxu0 %v3384_v44  ;;  %v3498_v30 = vunpack.i.l.bf16 %v5270_v23  ;;  %v3501_v58 = vunpack.i.h.bf16 %v5270_v23  ;;  %v5329_v23 = vld [vmem:[%s3846_s14 + $0x18] sm:$0xff] }
 0x4c6   : > { %v3386_v13 = vunpack.i.l.bf16 %v3385_v25  ;;  %v3389_v14 = vunpack.i.h.bf16 %v3385_v25 }
 0x4c8   : > { %2001 = vmatprep.mubr.f32.mxu0 %v3386_v13  ;;  %v5272_v9 = vpop.trf.xlu1 }
 0x4c9   : > { %v3390_v34 = vpop.trf.xlu0  ;;  %2002 = vmatmul.mubr.f32.gmra.mrb[88].mxu0 %v3389_v14  ;;  %v3503_v10 = vunpack.i.l.bf16 %v5272_v9  ;;  %v3506_v36 = vunpack.i.h.bf16 %v5272_v9  ;;  %v5333_v9 = vld [vmem:[%s3846_s14 + $0x20] sm:$0xff] }
 0x4ca   : > { %v3391_v24 = vunpack.i.l.bf16 %v3390_v34  ;;  %v3394_v3 = vunpack.i.h.bf16 %v3390_v34 }
 0x4cc   : > { %2006 = vmatprep.mubr.f32.mxu0 %v3391_v24  ;;  %v5274_v8 = vpop.trf.xlu1 }
 0x4cd   : > { %v3395_v22 = vpop.trf.xlu0  ;;  %2007 = vmatmul.mubr.f32.gmra.mrb[90].mxu0 %v3394_v3  ;;  %v3508_v38 = vunpack.i.l.bf16 %v5274_v8  ;;  %v3511_v28 = vunpack.i.h.bf16 %v5274_v8  ;;  %v5337_v8 = vld [vmem:[%s3846_s14 + $0x28] sm:$0xff] }
 0x4ce   : > { %v3396_v1 = vunpack.i.l.bf16 %v3395_v22  ;;  %v3399_v17 = vunpack.i.h.bf16 %v3395_v22 }
 0x4d0   : > { %2011 = vmatprep.mubr.f32.mxu0 %v3396_v1  ;;  %v5276_v18 = vpop.trf.xlu1 }
 0x4d1   : > { %v3400_v57 = vpop.trf.xlu0  ;;  %2012 = vmatmul.mubr.f32.gmra.mrb[92].mxu0 %v3399_v17  ;;  %v3513_v33 = vunpack.i.l.bf16 %v5276_v18  ;;  %v3516_v54 = vunpack.i.h.bf16 %v5276_v18  ;;  %v5341_v18 = vld [vmem:[%s3846_s14 + $0x30] sm:$0xff] }
 0x4d2   : > { %v3404_v11 = vunpack.i.h.bf16 %v3400_v57  ;;  %v3401_v51 = vunpack.i.l.bf16 %v3400_v57 }
 0x4d4   : > { %2016 = vmatprep.mubr.f32.mxu0 %v3401_v51  ;;  %v5345_v51 = vld [vmem:[%s3846_s14 + $0x38] sm:$0xff] }
 0x4d5   : > { %2017 = vmatmul.mubr.f32.gmra.mrb[94].mxu0 %v3404_v11 }
 0x4d6   : > { %2021 = vmatprep.mubr.f32.mxu0 %v3438_v53 }
 0x4d9   : > { %2022 = vmatmul.mubr.f32.gmra.mrb[96].mxu0 %v3441_v39 }
 0x4da   : > { %2026 = vmatprep.mubr.f32.mxu0 %v3443_v21 }
 0x4dd   : > { %2027 = vmatmul.mubr.f32.gmra.mrb[98].mxu0 %v3446_v6 }
 0x4de   : > { %2031 = vmatprep.mubr.f32.mxu0 %v3448_v49  ;;  %v5349_v49 = vld [vmem:[%s3846_s14 + $0x40] sm:$0xff] }
 0x4e1   : > { %2032 = vmatmul.mubr.f32.gmra.mrb[100].mxu0 %v3451_v20 }
 0x4e2   : > { %2036 = vmatprep.mubr.f32.mxu0 %v3453_v5 }
 0x4e5   : > { %2037 = vmatmul.mubr.f32.gmra.mrb[102].mxu0 %v3456_v29 }
 0x4e6   : > { %2041 = vmatprep.mubr.f32.mxu0 %v3458_v19  ;;  %v5353_v19 = vld [vmem:[%s3846_s14 + $0x48] sm:$0xff] }
 0x4e9   : > { %2042 = vmatmul.mubr.f32.gmra.mrb[104].mxu0 %v3461_v27 }
 0x4ea   : > { %2046 = vmatprep.mubr.f32.mxu0 %v3463_v26 }
 0x4ed   : > { %2047 = vmatmul.mubr.f32.gmra.mrb[106].mxu0 %v3466_v4 }
 0x4ee   : > { %2051 = vmatprep.mubr.f32.mxu0 %v3468_v48  ;;  %v5357_v48 = vld [vmem:[%s3846_s14 + $0x50] sm:$0xff] }
 0x4f1   : > { %2052 = vmatmul.mubr.f32.gmra.mrb[108].mxu0 %v3471_v63 }
 0x4f2   : > { %2056 = vmatprep.mubr.f32.mxu0 %v3473_v60  ;;  %v5361_v60 = vld [vmem:[%s3846_s14 + $0x58] sm:$0xff] }
 0x4f5   : > { %2057 = vmatmul.mubr.f32.gmra.mrb[110].mxu0 %v3476_v16 }
 0x4f6   : > { %2061 = vmatprep.mubr.f32.mxu0 %v3478_v15 }
 0x4f9   : > { %2062 = vmatmul.mubr.f32.gmra.mrb[112].mxu0 %v3481_v45  ;;  %v5365_v45 = vld [vmem:[%s3846_s14 + $0x60] sm:$0xff] }
 0x4fa   : > { %2066 = vmatprep.mubr.f32.mxu0 %v3483_v47 }
 0x4fd   : > { %2067 = vmatmul.mubr.f32.gmra.mrb[114].mxu0 %v3486_v7 }
 0x4fe   : > { %2071 = vmatprep.mubr.f32.mxu0 %v3488_v43 }
 0x501   : > { %2072 = vmatmul.mubr.f32.gmra.mrb[116].mxu0 %v3491_v52  ;;  %v5369_v52 = vld [vmem:[%s3846_s14 + $0x68] sm:$0xff] }
 0x502   : > { %2076 = vmatprep.mubr.f32.mxu0 %v3493_v46 }
 0x505   : > { %2077 = vmatmul.mubr.f32.gmra.mrb[118].mxu0 %v3496_v12 }
 0x506   : > { %2081 = vmatprep.mubr.f32.mxu0 %v3498_v30 }
 0x509   : > { %2082 = vmatmul.mubr.f32.gmra.mrb[120].mxu0 %v3501_v58  ;;  %v5373_v58 = vld [vmem:[%s3846_s14 + $0x70] sm:$0xff] }
 0x50a   : > { %2086 = vmatprep.mubr.f32.mxu0 %v3503_v10 }
 0x50d   : > { %2087 = vmatmul.mubr.f32.gmra.mrb[122].mxu0 %v3506_v36 }
 0x50e   : > { %2091 = vmatprep.mubr.f32.mxu0 %v3508_v38 }
 0x511   : > { %2092 = vmatmul.mubr.f32.gmra.mrb[124].mxu0 %v3511_v28  ;;  %v5377_v28 = vld [vmem:[%s3846_s14 + $0x78] sm:$0xff] }
 0x512   : > { %2096 = vmatprep.mubr.f32.mxu0 %v3513_v33 }
 0x515   : > { %2097 = vmatmul.mubr.f32.gmra.mrb[126].mxu0 %v3516_v54 }
 0x56c   : > { %v1943_v35 = vpop.f32.mrb[64].mxu0 }
 0x56d   : > { %v2102_v32 = vsub.f32 %v5317_v62, %v1943_v35  ;;  %v1945_v40 = vpop.f32.mrb[65].mxu0 }
 0x56f   : > { %3044 = vmatprep.mubr.f32.mxu1 %v2102_v32  ;;  %v5381_v32 = vld [vmem:[%s3846_s14 + $0x80] sm:$0xff] }
 0x570   : > { %v1948_v59 = vpop.f32.mrb[66].mxu0 }
 0x571   : > { %v2103_v55 = vsub.f32 %v5321_v42, %v1948_v59  ;;  %v1950_v0 = vpop.f32.mrb[67].mxu0 }
 0x572   : > { %v5385_v0 = vld [vmem:[%s3846_s14 + $0x88] sm:$0xff] }
 0x573   : > { %3045 = vmatmul.mubr.f32.vlgmr.msra.gmra.mrb[64].mxu1 %v2103_v55 }
 0x574   : > { %v1953_v31 = vpop.f32.mrb[68].mxu0 }
 0x575   : > { %v2104_v37 = vsub.f32 %v5325_v50, %v1953_v31  ;;  %v1955_v2 = vpop.f32.mrb[69].mxu0 }
 0x577   : > { %3047 = vmatprep.mubr.f32.mxu1 %v2104_v37 }
 0x578   : > { %v1958_v44 = vpop.f32.mrb[70].mxu0 }
 0x579   : > { %v2105_v25 = vsub.f32 %v5329_v23, %v1958_v44  ;;  %v1960_v13 = vpop.f32.mrb[71].mxu0  ;;  %v5389_v44 = vld [vmem:[%s3846_s14 + $0x90] sm:$0xff] }
 0x57b   : > { %3048 = vmatmul.mubr.f32.gmra.mrb[66].mxu1 %v2105_v25 }
 0x57c   : > { %v1963_v14 = vpop.f32.mrb[72].mxu0 }
 0x57d   : > { %v2106_v34 = vsub.f32 %v5333_v9, %v1963_v14  ;;  %v1965_v24 = vpop.f32.mrb[73].mxu0 }
 0x57f   : > { %3050 = vmatprep.mubr.f32.mxu1 %v2106_v34  ;;  %v5393_v34 = vld [vmem:[%s3846_s14 + $0x98] sm:$0xff] }
 0x580   : > { %v1968_v3 = vpop.f32.mrb[74].mxu0 }
 0x581   : > { %v2107_v22 = vsub.f32 %v5337_v8, %v1968_v3  ;;  %v1970_v1 = vpop.f32.mrb[75].mxu0 }
 0x582   : > { %v5397_v1 = vld [vmem:[%s3846_s14 + $0xa0] sm:$0xff] }
 0x583   : > { %3051 = vmatmul.mubr.f32.gmra.mrb[68].mxu1 %v2107_v22 }
 0x584   : > { %v1973_v17 = vpop.f32.mrb[76].mxu0 }
 0x585   : > { %v2108_v57 = vsub.f32 %v5341_v18, %v1973_v17  ;;  %v1975_v53 = vpop.f32.mrb[77].mxu0 }
 0x587   : > { %3053 = vmatprep.mubr.f32.mxu1 %v2108_v57 }
 0x588   : > { %v1978_v11 = vpop.f32.mrb[78].mxu0 }
 0x589   : > { %v2109_v39 = vsub.f32 %v5345_v51, %v1978_v11  ;;  %v1980_v21 = vpop.f32.mrb[79].mxu0  ;;  %v5401_v11 = vld [vmem:[%s3846_s14 + $0xa8] sm:$0xff] }
 0x58b   : > { %3054 = vmatmul.mubr.f32.gmra.mrb[70].mxu1 %v2109_v39 }
 0x58c   : > { %v1983_v6 = vpop.f32.mrb[80].mxu0 }
 0x58d   : > { %v2110_v20 = vsub.f32 %v5349_v49, %v1983_v6  ;;  %v1985_v5 = vpop.f32.mrb[81].mxu0 }
 0x58f   : > { %3056 = vmatprep.mubr.f32.mxu1 %v2110_v20  ;;  %v5405_v20 = vld [vmem:[%s3846_s14 + $0xb0] sm:$0xff] }
 0x590   : > { %v1988_v29 = vpop.f32.mrb[82].mxu0 }
 0x591   : > { %v2111_v27 = vsub.f32 %v5353_v19, %v1988_v29  ;;  %v1990_v26 = vpop.f32.mrb[83].mxu0 }
 0x592   : > { %v5409_v26 = vld [vmem:[%s3846_s14 + $0xb8] sm:$0xff] }
 0x593   : > { %3057 = vmatmul.mubr.f32.gmra.mrb[72].mxu1 %v2111_v27 }
 0x594   : > { %v1993_v4 = vpop.f32.mrb[84].mxu0 }
 0x595   : > { %v2112_v63 = vsub.f32 %v5357_v48, %v1993_v4  ;;  %v1995_v61 = vpop.f32.mrb[85].mxu0 }
 0x597   : > { %3059 = vmatprep.mubr.f32.mxu1 %v2112_v63 }
 0x598   : > { %v1998_v41 = vpop.f32.mrb[86].mxu0 }
 0x599   : > { %v2113_v56 = vsub.f32 %v5361_v60, %v1998_v41  ;;  %v2000_v16 = vpop.f32.mrb[87].mxu0  ;;  %v5413_v41 = vld [vmem:[%s3846_s14 + $0xc0] sm:$0xff] }
 0x59b   : > { %3060 = vmatmul.mubr.f32.gmra.mrb[74].mxu1 %v2113_v56 }
 0x59c   : > { %v2003_v15 = vpop.f32.mrb[88].mxu0 }
 0x59d   : > { %v2114_v47 = vsub.f32 %v5365_v45, %v2003_v15  ;;  %v2005_v7 = vpop.f32.mrb[89].mxu0 }
 0x59f   : > { %3062 = vmatprep.mubr.f32.mxu1 %v2114_v47  ;;  %v5417_v47 = vld [vmem:[%s3846_s14 + $0xc8] sm:$0xff] }
 0x5a0   : > { %v2008_v43 = vpop.f32.mrb[90].mxu0 }
 0x5a1   : > { %v2115_v46 = vsub.f32 %v5369_v52, %v2008_v43  ;;  %v2010_v12 = vpop.f32.mrb[91].mxu0 }
 0x5a2   : > { %v5421_v12 = vld [vmem:[%s3846_s14 + $0xd0] sm:$0xff] }
 0x5a3   : > { %3063 = vmatmul.mubr.f32.gmra.mrb[76].mxu1 %v2115_v46 }
 0x5a4   : > { %v2013_v30 = vpop.f32.mrb[92].mxu0 }
 0x5a5   : > { %v2116_v10 = vsub.f32 %v5373_v58, %v2013_v30  ;;  %v2015_v36 = vpop.f32.mrb[93].mxu0 }
 0x5a7   : > { %3065 = vmatprep.mubr.f32.mxu1 %v2116_v10 }
 0x5a8   : > { %v2018_v38 = vpop.f32.mrb[94].mxu0 }
 0x5a9   : > { %v2117_v33 = vsub.f32 %v5377_v28, %v2018_v38  ;;  %v2020_v54 = vpop.f32.mrb[95].mxu0  ;;  %v5425_v38 = vld [vmem:[%s3846_s14 + $0xd8] sm:$0xff] }
 0x5ab   : > { %3066 = vmatmul.mubr.f32.gmra.mrb[78].mxu1 %v2117_v33 }
 0x5ac   : > { %v2023_v35 = vpop.f32.mrb[96].mxu0 }
 0x5ad   : > { %v2118_v40 = vsub.f32 %v5381_v32, %v2023_v35  ;;  %v2025_v59 = vpop.f32.mrb[97].mxu0 }
 0x5af   : > { %3068 = vmatprep.mubr.f32.mxu1 %v2118_v40  ;;  %v5429_v40 = vld [vmem:[%s3846_s14 + $0xe0] sm:$0xff] }
 0x5b0   : > { %v2028_v55 = vpop.f32.mrb[98].mxu0 }
 0x5b1   : > { %v2119_v31 = vsub.f32 %v5385_v0, %v2028_v55  ;;  %v2030_v37 = vpop.f32.mrb[99].mxu0 }
 0x5b2   : > { %v5433_v37 = vld [vmem:[%s3846_s14 + $0xe8] sm:$0xff] }
 0x5b3   : > { %3069 = vmatmul.mubr.f32.gmra.mrb[80].mxu1 %v2119_v31 }
 0x5b4   : > { %v2033_v2 = vpop.f32.mrb[100].mxu0 }
 0x5b5   : > { %v2120_v25 = vsub.f32 %v5389_v44, %v2033_v2  ;;  %v2035_v13 = vpop.f32.mrb[101].mxu0 }
 0x5b7   : > { %3071 = vmatprep.mubr.f32.mxu1 %v2120_v25 }
 0x5b8   : > { %v2038_v14 = vpop.f32.mrb[102].mxu0 }
 0x5b9   : > { %v2121_v24 = vsub.f32 %v5393_v34, %v2038_v14  ;;  %v2040_v3 = vpop.f32.mrb[103].mxu0  ;;  %v5437_v14 = vld [vmem:[%s3846_s14 + $0xf0] sm:$0xff] }
 0x5bb   : > { %3072 = vmatmul.mubr.f32.gmra.mrb[82].mxu1 %v2121_v24 }
 0x5bc   : > { %v2043_v22 = vpop.f32.mrb[104].mxu0 }
 0x5bd   : > { %v2122_v17 = vsub.f32 %v5397_v1, %v2043_v22  ;;  %v2045_v57 = vpop.f32.mrb[105].mxu0 }
 0x5bf   : > { %3074 = vmatprep.mubr.f32.mxu1 %v2122_v17  ;;  %v5441_v17 = vld [vmem:[%s3846_s14 + $0xf8] sm:$0xff] }
 0x5c0   : > { %v2048_v53 = vpop.f32.mrb[106].mxu0 }
 0x5c1   : > { %v2123_v39 = vsub.f32 %v5401_v11, %v2048_v53  ;;  %v2050_v21 = vpop.f32.mrb[107].mxu0 }
 0x5c3   : > { %3075 = vmatmul.mubr.f32.gmra.mrb[84].mxu1 %v2123_v39  ;;  %v5447_v39 = vld [vmem:[%s5560_s5] ss:$0 sm:$0xff] }
 0x5c4   : > { %v2053_v6 = vpop.f32.mrb[108].mxu0 }
 0x5c5   : > { %v2124_v5 = vsub.f32 %v5405_v20, %v2053_v6  ;;  %v2055_v29 = vpop.f32.mrb[109].mxu0 }
 0x5c7   : > { %3077 = vmatprep.mubr.f32.mxu1 %v2124_v5 }
 0x5c8   : > { %v2058_v27 = vpop.f32.mrb[110].mxu0 }
 0x5c9   : > { %v2125_v4 = vsub.f32 %v5409_v26, %v2058_v27  ;;  %v2060_v63 = vpop.f32.mrb[111].mxu0 }
 0x5cb   : > { %3078 = vmatmul.mubr.f32.gmra.mrb[86].mxu1 %v2125_v4 }
 0x5cc   : > { %v2063_v61 = vpop.f32.mrb[112].mxu0 }
 0x5cd   : > { %v2126_v56 = vsub.f32 %v5413_v41, %v2063_v61  ;;  %v2065_v16 = vpop.f32.mrb[113].mxu0 }
 0x5cf   : > { %3080 = vmatprep.mubr.f32.mxu1 %v2126_v56 }
 0x5d0   : > { %v2068_v15 = vpop.f32.mrb[114].mxu0 }
 0x5d1   : > { %v2127_v7 = vsub.f32 %v5417_v47, %v2068_v15  ;;  %v2070_v43 = vpop.f32.mrb[115].mxu0 }
 0x5d3   : > { %3081 = vmatmul.mubr.f32.gmra.mrb[88].mxu1 %v2127_v7 }
 0x5d4   : > { %v2073_v46 = vpop.f32.mrb[116].mxu0 }
 0x5d5   : > { %v2128_v30 = vsub.f32 %v5421_v12, %v2073_v46  ;;  %v2075_v10 = vpop.f32.mrb[117].mxu0 }
 0x5d7   : > { %3083 = vmatprep.mubr.f32.mxu1 %v2128_v30 }
 0x5d8   : > { %v2078_v36 = vpop.f32.mrb[118].mxu0 }
 0x5d9   : > { %v2129_v33 = vsub.f32 %v5425_v38, %v2078_v36  ;;  %v2080_v54 = vpop.f32.mrb[119].mxu0 }
 0x5db   : > { %3084 = vmatmul.mubr.f32.gmra.mrb[90].mxu1 %v2129_v33 }
 0x5dc   : > { %v2083_v35 = vpop.f32.mrb[120].mxu0 }
 0x5dd   : > { %v2130_v59 = vsub.f32 %v5429_v40, %v2083_v35  ;;  %v2085_v55 = vpop.f32.mrb[121].mxu0 }
 0x5df   : > { %3086 = vmatprep.mubr.f32.mxu1 %v2130_v59 }
 0x5e0   : > { %v2088_v31 = vpop.f32.mrb[122].mxu0 }
 0x5e1   : > { %v2131_v2 = vsub.f32 %v5433_v37, %v2088_v31  ;;  %v2090_v25 = vpop.f32.mrb[123].mxu0 }
 0x5e3   : > { %3087 = vmatmul.mubr.f32.gmra.mrb[92].mxu1 %v2131_v2 }
 0x5e4   : > { %v2093_v13 = vpop.f32.mrb[124].mxu0 }
 0x5e5   : > { %v2132_v24 = vsub.f32 %v5437_v14, %v2093_v13  ;;  %v2095_v3 = vpop.f32.mrb[125].mxu0 }
 0x5e7   : > { %3089 = vmatprep.mubr.f32.mxu1 %v2132_v24 }
 0x5e8   : > { %v2098_v22 = vpop.f32.mrb[126].mxu0 }
 0x5e9   : > { %v2133_v57 = vsub.f32 %v5441_v17, %v2098_v22  ;;  %v2100_v53 = vpop.f32.mrb[127].mxu0 }
 0x5eb   : > { %3090 = vmatmul.mubr.f32.gmra.mrb[94].mxu1 %v2133_v57 }
 0x646   : > { %v3046_v21 = vpop.f32.mrb[64].mxu1 }
 0x647   : > { %v2229_v6 = vadd.f32 %v3046_v21, %v5447_v39  ;;  %v2223_v5 = vpop.f32.mrb[65].mxu1 }
 0x648   : > { %v2224_v29 = vadd.f32 %v5447_v39, %v2223_v5 }
 0x649   : > { %v2383_v27 = vmax.f32 %v2229_v6, 0.0 }
 0x64a   : > { %v2382_v4 = vmax.f32 %v2224_v29, 0.0 }
 0x64b   : > { %v2415_v63 = vadd.f32 %v5321_v42, %v2383_v27 }
 0x64c   : > { %v2414_v61 = vadd.f32 %v5317_v62, %v2382_v4 }
 0x64d   : > { %2447 = vst [vmem:[%s5456_s26 + $0x8] sm:$0xff] %v2415_v63 }
 0x64e   : > { %2446 = vst [vmem:[%s5456_s26] sm:$0xff] %v2414_v61  ;;  %v3049_v56 = vpop.f32.mrb[66].mxu1 }
 0x64f   : > { %v2239_v16 = vadd.f32 %v3049_v56, %v5447_v39  ;;  %v2233_v15 = vpop.f32.mrb[67].mxu1 }
 0x650   : > { %v2234_v7 = vadd.f32 %v5447_v39, %v2233_v15 }
 0x651   : > { %v2385_v43 = vmax.f32 %v2239_v16, 0.0 }
 0x652   : > { %v2384_v46 = vmax.f32 %v2234_v7, 0.0 }
 0x653   : > { %v2417_v30 = vadd.f32 %v5329_v23, %v2385_v43 }
 0x654   : > { %v2416_v10 = vadd.f32 %v5325_v50, %v2384_v46 }
 0x655   : > { %2449 = vst [vmem:[%s5456_s26 + $0x18] sm:$0xff] %v2417_v30 }
 0x656   : > { %2448 = vst [vmem:[%s5456_s26 + $0x10] sm:$0xff] %v2416_v10  ;;  %v3052_v42 = vpop.f32.mrb[68].mxu1 }
 0x657   : > { %v2249_v62 = vadd.f32 %v3052_v42, %v5447_v39  ;;  %v2243_v36 = vpop.f32.mrb[69].mxu1 }
 0x658   : > { %v2244_v33 = vadd.f32 %v5447_v39, %v2243_v36 }
 0x659   : > { %v2387_v54 = vmax.f32 %v2249_v62, 0.0 }
 0x65a   : > { %v2386_v35 = vmax.f32 %v2244_v33, 0.0 }
 0x65b   : > { %v2419_v59 = vadd.f32 %v5337_v8, %v2387_v54 }
 0x65c   : > { %v2418_v55 = vadd.f32 %v5333_v9, %v2386_v35 }
 0x65d   : > { %2451 = vst [vmem:[%s5456_s26 + $0x28] sm:$0xff] %v2419_v59 }
 0x65e   : > { %2450 = vst [vmem:[%s5456_s26 + $0x20] sm:$0xff] %v2418_v55  ;;  %v3055_v23 = vpop.f32.mrb[70].mxu1 }
 0x65f   : > { %v2259_v50 = vadd.f32 %v3055_v23, %v5447_v39  ;;  %v2253_v31 = vpop.f32.mrb[71].mxu1 }
 0x660   : > { %v2254_v2 = vadd.f32 %v5447_v39, %v2253_v31 }
 0x661   : > { %v2389_v25 = vmax.f32 %v2259_v50, 0.0 }
 0x662   : > { %v2388_v13 = vmax.f32 %v2254_v2, 0.0 }
 0x663   : > { %v2421_v24 = vadd.f32 %v5345_v51, %v2389_v25 }
 0x664   : > { %v2420_v3 = vadd.f32 %v5341_v18, %v2388_v13 }
 0x665   : > { %2453 = vst [vmem:[%s5456_s26 + $0x38] sm:$0xff] %v2421_v24 }
 0x666   : > { %2452 = vst [vmem:[%s5456_s26 + $0x30] sm:$0xff] %v2420_v3  ;;  %v3058_v8 = vpop.f32.mrb[72].mxu1 }
 0x667   : > { %v2269_v9 = vadd.f32 %v3058_v8, %v5447_v39  ;;  %v2263_v22 = vpop.f32.mrb[73].mxu1 }
 0x668   : > { %v2264_v57 = vadd.f32 %v5447_v39, %v2263_v22 }
 0x669   : > { %v2391_v53 = vmax.f32 %v2269_v9, 0.0 }
 0x66a   : > { %v2390_v21 = vmax.f32 %v2264_v57, 0.0 }
 0x66b   : > { %v2423_v6 = vadd.f32 %v5353_v19, %v2391_v53 }
 0x66c   : > { %v2422_v5 = vadd.f32 %v5349_v49, %v2390_v21 }
 0x66d   : > { %2455 = vst [vmem:[%s5456_s26 + $0x48] sm:$0xff] %v2423_v6 }
 0x66e   : > { %2454 = vst [vmem:[%s5456_s26 + $0x40] sm:$0xff] %v2422_v5  ;;  %v3061_v51 = vpop.f32.mrb[74].mxu1 }
 0x66f   : > { %v2279_v18 = vadd.f32 %v3061_v51, %v5447_v39  ;;  %v2273_v29 = vpop.f32.mrb[75].mxu1 }
 0x670   : > { %v2274_v27 = vadd.f32 %v5447_v39, %v2273_v29 }
 0x671   : > { %v2393_v4 = vmax.f32 %v2279_v18, 0.0 }
 0x672   : > { %v2392_v63 = vmax.f32 %v2274_v27, 0.0 }
 0x673   : > { %v2425_v61 = vadd.f32 %v5361_v60, %v2393_v4 }
 0x674   : > { %v2424_v56 = vadd.f32 %v5357_v48, %v2392_v63 }
 0x675   : > { %2457 = vst [vmem:[%s5456_s26 + $0x58] sm:$0xff] %v2425_v61 }
 0x676   : > { %2456 = vst [vmem:[%s5456_s26 + $0x50] sm:$0xff] %v2424_v56  ;;  %v3064_v19 = vpop.f32.mrb[76].mxu1 }
 0x677   : > { %v2289_v49 = vadd.f32 %v3064_v19, %v5447_v39  ;;  %v2283_v16 = vpop.f32.mrb[77].mxu1 }
 0x678   : > { %v2284_v15 = vadd.f32 %v5447_v39, %v2283_v16 }
 0x679   : > { %v2395_v7 = vmax.f32 %v2289_v49, 0.0 }
 0x67a   : > { %v2394_v43 = vmax.f32 %v2284_v15, 0.0 }
 0x67b   : > { %v2427_v46 = vadd.f32 %v5369_v52, %v2395_v7 }
 0x67c   : > { %v2426_v30 = vadd.f32 %v5365_v45, %v2394_v43 }
 0x67d   : > { %2459 = vst [vmem:[%s5456_s26 + $0x68] sm:$0xff] %v2427_v46 }
 0x67e   : > { %2458 = vst [vmem:[%s5456_s26 + $0x60] sm:$0xff] %v2426_v30  ;;  %v3067_v60 = vpop.f32.mrb[78].mxu1 }
 0x67f   : > { %v2299_v48 = vadd.f32 %v3067_v60, %v5447_v39  ;;  %v2293_v10 = vpop.f32.mrb[79].mxu1 }
 0x680   : > { %v2294_v42 = vadd.f32 %v5447_v39, %v2293_v10 }
 0x681   : > { %v2397_v62 = vmax.f32 %v2299_v48, 0.0 }
 0x682   : > { %v2396_v36 = vmax.f32 %v2294_v42, 0.0 }
 0x683   : > { %v2429_v33 = vadd.f32 %v5377_v28, %v2397_v62 }
 0x684   : > { %v2428_v54 = vadd.f32 %v5373_v58, %v2396_v36 }
 0x685   : > { %2461 = vst [vmem:[%s5456_s26 + $0x78] sm:$0xff] %v2429_v33 }
 0x686   : > { %2460 = vst [vmem:[%s5456_s26 + $0x70] sm:$0xff] %v2428_v54  ;;  %v3070_v52 = vpop.f32.mrb[80].mxu1 }
 0x687   : > { %v2309_v45 = vadd.f32 %v3070_v52, %v5447_v39  ;;  %v2303_v35 = vpop.f32.mrb[81].mxu1 }
 0x688   : > { %v2304_v59 = vadd.f32 %v5447_v39, %v2303_v35 }
 0x689   : > { %v2399_v55 = vmax.f32 %v2309_v45, 0.0 }
 0x68a   : > { %v2398_v23 = vmax.f32 %v2304_v59, 0.0 }
 0x68b   : > { %v2431_v50 = vadd.f32 %v5385_v0, %v2399_v55 }
 0x68c   : > { %v2430_v31 = vadd.f32 %v5381_v32, %v2398_v23 }
 0x68d   : > { %2463 = vst [vmem:[%s5456_s26 + $0x88] sm:$0xff] %v2431_v50 }
 0x68e   : > { %2462 = vst [vmem:[%s5456_s26 + $0x80] sm:$0xff] %v2430_v31  ;;  %v3073_v28 = vpop.f32.mrb[82].mxu1 }
 0x68f   : > { %v2319_v58 = vadd.f32 %v3073_v28, %v5447_v39  ;;  %v2313_v2 = vpop.f32.mrb[83].mxu1 }
 0x690   : > { %v2314_v25 = vadd.f32 %v5447_v39, %v2313_v2 }
 0x691   : > { %v2401_v13 = vmax.f32 %v2319_v58, 0.0 }
 0x692   : > { %v2400_v24 = vmax.f32 %v2314_v25, 0.0 }
 0x693   : > { %v2433_v3 = vadd.f32 %v5393_v34, %v2401_v13 }
 0x694   : > { %v2432_v8 = vadd.f32 %v5389_v44, %v2400_v24 }
 0x695   : > { %2465 = vst [vmem:[%s5456_s26 + $0x98] sm:$0xff] %v2433_v3 }
 0x696   : > { %2464 = vst [vmem:[%s5456_s26 + $0x90] sm:$0xff] %v2432_v8  ;;  %v3076_v0 = vpop.f32.mrb[84].mxu1 }
 0x697   : > { %v2329_v32 = vadd.f32 %v3076_v0, %v5447_v39  ;;  %v2323_v9 = vpop.f32.mrb[85].mxu1 }
 0x698   : > { %v2324_v22 = vadd.f32 %v5447_v39, %v2323_v9 }
 0x699   : > { %v2403_v57 = vmax.f32 %v2329_v32, 0.0 }
 0x69a   : > { %v2402_v53 = vmax.f32 %v2324_v22, 0.0 }
 0x69b   : > { %v2435_v21 = vadd.f32 %v5401_v11, %v2403_v57 }
 0x69c   : > { %v2434_v6 = vadd.f32 %v5397_v1, %v2402_v53 }
 0x69d   : > { %2467 = vst [vmem:[%s5456_s26 + $0xa8] sm:$0xff] %v2435_v21 }
 0x69e   : > { %2466 = vst [vmem:[%s5456_s26 + $0xa0] sm:$0xff] %v2434_v6  ;;  %v3079_v34 = vpop.f32.mrb[86].mxu1 }
 0x69f   : > { %v2339_v44 = vadd.f32 %v3079_v34, %v5447_v39  ;;  %v2333_v5 = vpop.f32.mrb[87].mxu1 }
 0x6a0   : > { %v2334_v51 = vadd.f32 %v5447_v39, %v2333_v5 }
 0x6a1   : > { %v2405_v18 = vmax.f32 %v2339_v44, 0.0 }
 0x6a2   : > { %v2404_v29 = vmax.f32 %v2334_v51, 0.0 }
 0x6a3   : > { %v2437_v27 = vadd.f32 %v5409_v26, %v2405_v18 }
 0x6a4   : > { %v2436_v4 = vadd.f32 %v5405_v20, %v2404_v29 }
 0x6a5   : > { %2469 = vst [vmem:[%s5456_s26 + $0xb8] sm:$0xff] %v2437_v27 }
 0x6a6   : > { %2468 = vst [vmem:[%s5456_s26 + $0xb0] sm:$0xff] %v2436_v4  ;;  %v3082_v11 = vpop.f32.mrb[88].mxu1 }
 0x6a7   : > { %v2349_v1 = vadd.f32 %v3082_v11, %v5447_v39  ;;  %v2343_v63 = vpop.f32.mrb[89].mxu1 }
 0x6a8   : > { %v2344_v61 = vadd.f32 %v5447_v39, %v2343_v63 }
 0x6a9   : > { %v2407_v56 = vmax.f32 %v2349_v1, 0.0 }
 0x6aa   : > { %v2406_v19 = vmax.f32 %v2344_v61, 0.0 }
 0x6ab   : > { %v2439_v49 = vadd.f32 %v5417_v47, %v2407_v56 }
 0x6ac   : > { %v2438_v16 = vadd.f32 %v5413_v41, %v2406_v19 }
 0x6ad   : > { %2471 = vst [vmem:[%s5456_s26 + $0xc8] sm:$0xff] %v2439_v49 }
 0x6ae   : > { %2470 = vst [vmem:[%s5456_s26 + $0xc0] sm:$0xff] %v2438_v16  ;;  %v3085_v26 = vpop.f32.mrb[90].mxu1 }
 0x6af   : > { %v2359_v20 = vadd.f32 %v3085_v26, %v5447_v39  ;;  %v2353_v15 = vpop.f32.mrb[91].mxu1 }
 0x6b0   : > { %v2354_v7 = vadd.f32 %v5447_v39, %v2353_v15 }
 0x6b1   : > { %v2409_v43 = vmax.f32 %v2359_v20, 0.0 }
 0x6b2   : > { %v2408_v46 = vmax.f32 %v2354_v7, 0.0 }
 0x6b3   : > { %v2441_v30 = vadd.f32 %v5425_v38, %v2409_v43 }
 0x6b4   : > { %v2440_v60 = vadd.f32 %v5421_v12, %v2408_v46 }
 0x6b5   : > { %2473 = vst [vmem:[%s5456_s26 + $0xd8] sm:$0xff] %v2441_v30 }
 0x6b6   : > { %2472 = vst [vmem:[%s5456_s26 + $0xd0] sm:$0xff] %v2440_v60  ;;  %v3088_v47 = vpop.f32.mrb[92].mxu1 }
 0x6b7   : > { %v2369_v41 = vadd.f32 %v3088_v47, %v5447_v39  ;;  %v2363_v48 = vpop.f32.mrb[93].mxu1 }
 0x6b8   : > { %v2364_v10 = vadd.f32 %v5447_v39, %v2363_v48 }
 0x6b9   : > { %v2411_v42 = vmax.f32 %v2369_v41, 0.0 }
 0x6ba   : > { %v2410_v62 = vmax.f32 %v2364_v10, 0.0 }
 0x6bb   : > { %v2443_v36 = vadd.f32 %v5433_v37, %v2411_v42 }
 0x6bc   : > { %v2442_v33 = vadd.f32 %v5429_v40, %v2410_v62 }
 0x6bd   : > { %2475 = vst [vmem:[%s5456_s26 + $0xe8] sm:$0xff] %v2443_v36 }
 0x6be   : > { %2474 = vst [vmem:[%s5456_s26 + $0xe0] sm:$0xff] %v2442_v33  ;;  %v3091_v38 = vpop.f32.mrb[94].mxu1 }
 0x6bf   : > { %v2379_v12 = vadd.f32 %v3091_v38, %v5447_v39  ;;  %v2373_v54 = vpop.f32.mrb[95].mxu1 }
 0x6c0   : > { %v2374_v52 = vadd.f32 %v5447_v39, %v2373_v54 }
 0x6c1   : > { %v2413_v45 = vmax.f32 %v2379_v12, 0.0 }
 0x6c2   : > { %v2412_v35 = vmax.f32 %v2374_v52, 0.0 }
 0x6c3   : > { %v2445_v59 = vadd.f32 %v5441_v17, %v2413_v45 }
 0x6c4   : > { %v2444_v55 = vadd.f32 %v5437_v14, %v2412_v35 }
 0x6c5   : > { %2477 = vst [vmem:[%s5456_s26 + $0xf8] sm:$0xff] %v2445_v59 }
 0x6c6   : > { %2476 = vst [vmem:[%s5456_s26 + $0xf0] sm:$0xff] %v2444_v55 }
 0x6c7 PF: > { %s16_s21 = sadd.s32 1, %s3774_s21  }
 0x6c8   : > { %p13_p4 = scmp.ge.s32.totalorder %s16_s21, 4  }
 0x6ca   :  { %15 = sbr.rel (!%p13_p4) target bundleno = 1 (0x1), region = 74 }

</bundles_post_ra>
